<compile_context>
chip_gen: v5e
topology: v5e:2x2
jax: 0.10.0
libtpu: 0.0.40
codegen_flags: <defaults>
</compile_context>

<pallas_src>
import jax
import jax.numpy as jnp
from jax import lax
from jax.experimental import pallas as pl
from jax.experimental.pallas import tpu as pltpu


def _ddepthwise_kernel(x_ref, w_ref, b_ref, o_ref, rm_ref):
    # x_ref:  (B, H, W, Cin)      unpadded input images (one block of the batch)
    # w_ref:  (9*Cin, Cout)       conv weights flattened over (dy, dx, cin)
    # b_ref:  (1, Cout)           conv bias
    # o_ref:  (B, Ho, Wo, Cout)   pooled output, Ho = H//2 + 1, Wo = W//2 + 1
    # rm_ref: (B*Ho, W, Cout)     VMEM scratch holding the row-pooled conv result
    bB, h, w, cin = x_ref.shape
    _, ho, wo, cout = o_ref.shape
    neg_inf = jnp.float32(-jnp.inf)

    # ---- zero padding for the conv, done in-kernel (leading-dim + sublane concats) ----
    x = x_ref[...]                                                  # (B, H, W, Cin)
    zrow = jnp.zeros((bB, 1, w, cin), x.dtype)
    xh = jnp.concatenate([zrow, x, zrow], axis=1)                   # (B, H+2, W, Cin)
    zcol = jnp.zeros((bB, h + 2, 1, cin), x.dtype)
    xp = jnp.concatenate([zcol, xh, zcol], axis=2)                  # (B, H+2, W+2, Cin)

    # ---- 3x3 conv, stride 1, pad 1: a single MXU matmul with K = 9*Cin ----
    m = bB * h * w
    taps = [xp[:, dy:dy + h, dx:dx + w, :].reshape(m, cin)
            for dy in range(3) for dx in range(3)]
    col = jnp.concatenate(taps, axis=-1)                            # (B*H*W, 9*Cin)
    acc = jnp.dot(col, w_ref[...], preferred_element_type=jnp.float32)
    acc = acc + b_ref[...]                                          # broadcast (1, Cout)
    conv = acc.reshape(bB, h, w, cout)                              # (B, H, W, Cout)

    # ---- MaxPool2d(kernel=2, stride=2, padding=1), pad value -inf ----
    # Row pooling: even/odd rows via a leading-dim split, then shift-and-max.
    #   out_row[0]      = conv_row[0]
    #   out_row[i]      = max(conv_row[2i-1], conv_row[2i]),  1 <= i <= H/2 - 1
    #   out_row[H/2]    = conv_row[H-1]
    pr = conv.reshape(bB, h // 2, 2, w, cout)
    r_even, r_odd = pr[:, :, 0], pr[:, :, 1]                        # (B, H/2, W, Cout)
    ninf_r = jnp.full((bB, 1, w, cout), neg_inf, jnp.float32)
    rowmax = jnp.maximum(jnp.concatenate([r_even, ninf_r], axis=1),
                         jnp.concatenate([ninf_r, r_odd], axis=1))  # (B, Ho, W, Cout)

    # Column pooling: one aligned scratch store + two stride-2 sublane reads + one max.
    rm_ref[...] = rowmax.reshape(bB * ho, w, cout)
    c_even = rm_ref[:, pl.ds(0, w // 2, 2), :]                      # cols 0, 2, ..., W-2
    c_odd = rm_ref[:, pl.ds(1, w // 2, 2), :]                       # cols 1, 3, ..., W-1
    ninf_c = jnp.full((bB * ho, 1, cout), neg_inf, jnp.float32)
    colmax = jnp.maximum(jnp.concatenate([c_even, ninf_c], axis=1),
                         jnp.concatenate([ninf_c, c_odd], axis=1))  # (B*Ho, Wo, Cout)

    o_ref[...] = colmax.reshape(bB, ho, wo, cout).astype(o_ref.dtype)


def _pick_block_batch(n):
    """Largest divisor of n that keeps >=2 grid steps (v7x: 2 TCs) and VMEM small."""
    cap = max(1, min(8, n // 2)) if n >= 2 else 1
    for b in range(cap, 0, -1):
        if n % b == 0:
            return b
    return 1


def ddepthwise_forward(x_nchw, w_oihw, bias):
    """Conv2d(Cin->Cout, 3, stride 1, pad 1) + MaxPool2d(2, 2, pad 1); NCHW in/out."""
    n, cin, h, w = x_nchw.shape
    cout = w_oihw.shape[0]
    assert h % 2 == 0 and w % 2 == 0, "kernel assumes even spatial dims"
    ho, wo = h // 2 + 1, w // 2 + 1

    x_nhwc = jnp.transpose(x_nchw, (0, 2, 3, 1)).astype(jnp.float32)      # (N, H, W, Cin)
    w_flat = jnp.transpose(w_oihw, (2, 3, 1, 0)).astype(jnp.float32)      # (3, 3, Cin, Cout)
    w_flat = w_flat.reshape(9 * cin, cout)                                # (9*Cin, Cout)
    b2 = bias.reshape(1, cout).astype(jnp.float32)

    bb = _pick_block_batch(n)
    grid = (n // bb,)

    out_nhwc = pl.pallas_call(
        _ddepthwise_kernel,
        out_shape=jax.ShapeDtypeStruct((n, ho, wo, cout), jnp.float32),
        grid_spec=pltpu.PrefetchScalarGridSpec(
            num_scalar_prefetch=0,
            grid=grid,
            in_specs=[
                pl.BlockSpec((bb, h, w, cin), lambda b: (b, 0, 0, 0)),
                pl.BlockSpec((9 * cin, cout), lambda b: (0, 0)),
                pl.BlockSpec((1, cout), lambda b: (0, 0)),
            ],
            out_specs=pl.BlockSpec((bb, ho, wo, cout), lambda b: (b, 0, 0, 0)),
            scratch_shapes=[pltpu.VMEM((bb * ho, w, cout), jnp.float32)],
        ),
        compiler_params=pltpu.CompilerParams(
            dimension_semantics=("parallel",)),
    )(x_nhwc, w_flat, b2)

    return jnp.transpose(out_nhwc, (0, 3, 1, 2))                          # back to NCHW


def _reference(x_nchw, w_oihw, bias):
    conv = lax.conv_general_dilated(
        x_nchw.astype(jnp.float32), w_oihw.astype(jnp.float32),
        window_strides=(1, 1), padding=((1, 1), (1, 1)),
        dimension_numbers=("NCHW", "OIHW", "NCHW"))
    conv = conv + bias.reshape(1, -1, 1, 1)
    pooled = lax.reduce_window(
        conv, -jnp.inf, lax.max,
        window_dimensions=(1, 1, 2, 2), window_strides=(1, 1, 2, 2),
        padding=((0, 0), (0, 0), (1, 1), (1, 1)))
    return pooled


if __name__ == "__main__":
    key = jax.random.PRNGKey(0)
    kx, kw, kb = jax.random.split(key, 3)

    N, C_IN, C_OUT, H, W = 2, 4, 8, 16, 16
    x = jax.random.normal(kx, (N, C_IN, H, W), jnp.float32)

    # Deterministic params matching nn.Conv2d(in=4, out=8, k=3) shapes / default init range.
    bound = 1.0 / (C_IN * 3 * 3) ** 0.5
    weight = jax.random.uniform(kw, (C_OUT, C_IN, 3, 3), jnp.float32, -bound, bound)
    bias = jax.random.uniform(kb, (C_OUT,), jnp.float32, -bound, bound)

    out = jax.block_until_ready(ddepthwise_forward(x, weight, bias))
    assert out.shape == (N, C_OUT, H // 2 + 1, W // 2 + 1), out.shape

    ref = _reference(x, weight, bias)
    assert jnp.allclose(out, ref, atol=1e-4, rtol=1e-4), float(jnp.max(jnp.abs(out - ref)))

    print("KERNEL_OK")
</pallas_src>

<mosaic_0001>
module attributes {stable_mosaic.version = 11 : i64} {
  func.func @_ddepthwise_kernel(%arg0: i32, %arg1: memref<1x16x16x4xf32, #tpu.memory_space<vmem>>, %arg2: memref<36x8xf32, #tpu.memory_space<vmem>>, %arg3: memref<1x8xf32, #tpu.memory_space<vmem>>, %arg4: memref<1x9x9x8xf32, #tpu.memory_space<vmem>>, %arg5: memref<9x16x8xf32, #tpu.memory_space<vmem>>) attributes {dimension_semantics = [#tpu.dimension_semantics<parallel>], iteration_bounds = array<i64: 2>, scalar_prefetch = 0 : i64, scratch_operands = 1 : i64, tpu.core_type = #tpu.core_type<tc>, window_params = [{transform_indices = @transform_0, window_bounds = array<i64: 1, 16, 16, 4>}, {pipeline_mode = #tpu.pipeline_mode<synchronous>, transform_indices = @transform_1, window_bounds = array<i64: 36, 8>}, {pipeline_mode = #tpu.pipeline_mode<synchronous>, transform_indices = @transform_2, window_bounds = array<i64: 1, 8>}, {transform_indices = @transform_3, window_bounds = array<i64: 1, 9, 9, 8>}]} {
    %c0 = arith.constant 0 : index
    %c0_0 = arith.constant 0 : index
    %c0_1 = arith.constant 0 : index
    %c0_2 = arith.constant 0 : index
    %0 = vector.load %arg1[%c0, %c0_0, %c0_1, %c0_2] : memref<1x16x16x4xf32, #tpu.memory_space<vmem>>, vector<1x16x16x4xf32>
    %cst = arith.constant 0.000000e+00 : f32
    %1 = vector.broadcast %cst : f32 to vector<1x1x16x4xf32>
    %2 = tpu.concatenate %1, %0, %1 in 1 : vector<1x1x16x4xf32>, vector<1x16x16x4xf32>, vector<1x1x16x4xf32> -> vector<1x18x16x4xf32>
    %cst_3 = arith.constant 0.000000e+00 : f32
    %3 = vector.broadcast %cst_3 : f32 to vector<1x18x1x4xf32>
    %4 = tpu.concatenate %3, %2, %3 in 2 : vector<1x18x1x4xf32>, vector<1x18x16x4xf32>, vector<1x18x1x4xf32> -> vector<1x18x18x4xf32>
    %5 = vector.extract_strided_slice %4 {offsets = [0, 0, 0, 0], sizes = [1, 16, 16, 4], strides = [1, 1, 1, 1]} : vector<1x18x18x4xf32> to vector<1x16x16x4xf32>
    %6 = vector.shape_cast %5 : vector<1x16x16x4xf32> to vector<256x4xf32>
    %7 = vector.extract_strided_slice %4 {offsets = [0, 0, 1, 0], sizes = [1, 16, 16, 4], strides = [1, 1, 1, 1]} : vector<1x18x18x4xf32> to vector<1x16x16x4xf32>
    %8 = vector.shape_cast %7 : vector<1x16x16x4xf32> to vector<256x4xf32>
    %9 = vector.extract_strided_slice %4 {offsets = [0, 0, 2, 0], sizes = [1, 16, 16, 4], strides = [1, 1, 1, 1]} : vector<1x18x18x4xf32> to vector<1x16x16x4xf32>
    %10 = vector.shape_cast %9 : vector<1x16x16x4xf32> to vector<256x4xf32>
    %11 = vector.extract_strided_slice %4 {offsets = [0, 1, 0, 0], sizes = [1, 16, 16, 4], strides = [1, 1, 1, 1]} : vector<1x18x18x4xf32> to vector<1x16x16x4xf32>
    %12 = vector.shape_cast %11 : vector<1x16x16x4xf32> to vector<256x4xf32>
    %13 = vector.extract_strided_slice %4 {offsets = [0, 1, 1, 0], sizes = [1, 16, 16, 4], strides = [1, 1, 1, 1]} : vector<1x18x18x4xf32> to vector<1x16x16x4xf32>
    %14 = vector.shape_cast %13 : vector<1x16x16x4xf32> to vector<256x4xf32>
    %15 = vector.extract_strided_slice %4 {offsets = [0, 1, 2, 0], sizes = [1, 16, 16, 4], strides = [1, 1, 1, 1]} : vector<1x18x18x4xf32> to vector<1x16x16x4xf32>
    %16 = vector.shape_cast %15 : vector<1x16x16x4xf32> to vector<256x4xf32>
    %17 = vector.extract_strided_slice %4 {offsets = [0, 2, 0, 0], sizes = [1, 16, 16, 4], strides = [1, 1, 1, 1]} : vector<1x18x18x4xf32> to vector<1x16x16x4xf32>
    %18 = vector.shape_cast %17 : vector<1x16x16x4xf32> to vector<256x4xf32>
    %19 = vector.extract_strided_slice %4 {offsets = [0, 2, 1, 0], sizes = [1, 16, 16, 4], strides = [1, 1, 1, 1]} : vector<1x18x18x4xf32> to vector<1x16x16x4xf32>
    %20 = vector.shape_cast %19 : vector<1x16x16x4xf32> to vector<256x4xf32>
    %21 = vector.extract_strided_slice %4 {offsets = [0, 2, 2, 0], sizes = [1, 16, 16, 4], strides = [1, 1, 1, 1]} : vector<1x18x18x4xf32> to vector<1x16x16x4xf32>
    %22 = vector.shape_cast %21 : vector<1x16x16x4xf32> to vector<256x4xf32>
    %23 = tpu.concatenate %6, %8, %10, %12, %14, %16, %18, %20, %22 in 1 : vector<256x4xf32>, vector<256x4xf32>, vector<256x4xf32>, vector<256x4xf32>, vector<256x4xf32>, vector<256x4xf32>, vector<256x4xf32>, vector<256x4xf32>, vector<256x4xf32> -> vector<256x36xf32>
    %c0_4 = arith.constant 0 : index
    %c0_5 = arith.constant 0 : index
    %24 = vector.load %arg2[%c0_4, %c0_5] : memref<36x8xf32, #tpu.memory_space<vmem>>, vector<36x8xf32>
    %cst_6 = arith.constant dense<0.000000e+00> : vector<256x8xf32>
    %25 = tpu.matmul %23, %24, %cst_6 {dimension_numbers = #tpu.dot_dimension_numbers<[1], [0], [0], [1], [0, 0, 1, 1], [], []>} : vector<256x36xf32>, vector<36x8xf32>, vector<256x8xf32> -> vector<256x8xf32>
    %c0_7 = arith.constant 0 : index
    %c0_8 = arith.constant 0 : index
    %26 = vector.load %arg3[%c0_7, %c0_8] : memref<1x8xf32, #tpu.memory_space<vmem>>, vector<1x8xf32>
    %27 = vector.broadcast %26 : vector<1x8xf32> to vector<256x8xf32>
    %28 = arith.addf %25, %27 : vector<256x8xf32>
    %29 = vector.shape_cast %28 : vector<256x8xf32> to vector<1x16x16x8xf32>
    %30 = vector.shape_cast %29 : vector<1x16x16x8xf32> to vector<1x8x2x16x8xf32>
    %31 = vector.extract_strided_slice %30 {offsets = [0, 0, 0, 0, 0], sizes = [1, 8, 1, 16, 8], strides = [1, 1, 1, 1, 1]} : vector<1x8x2x16x8xf32> to vector<1x8x1x16x8xf32>
    %32 = vector.shape_cast %31 : vector<1x8x1x16x8xf32> to vector<1x8x16x8xf32>
    %33 = vector.extract_strided_slice %30 {offsets = [0, 0, 1, 0, 0], sizes = [1, 8, 1, 16, 8], strides = [1, 1, 1, 1, 1]} : vector<1x8x2x16x8xf32> to vector<1x8x1x16x8xf32>
    %34 = vector.shape_cast %33 : vector<1x8x1x16x8xf32> to vector<1x8x16x8xf32>
    %cst_9 = arith.constant 0xFF800000 : f32
    %35 = vector.broadcast %cst_9 : f32 to vector<1x1x16x8xf32>
    %36 = tpu.concatenate %32, %35 in 1 : vector<1x8x16x8xf32>, vector<1x1x16x8xf32> -> vector<1x9x16x8xf32>
    %37 = tpu.concatenate %35, %34 in 1 : vector<1x1x16x8xf32>, vector<1x8x16x8xf32> -> vector<1x9x16x8xf32>
    %38 = arith.maximumf %36, %37 : vector<1x9x16x8xf32>
    %39 = vector.shape_cast %38 : vector<1x9x16x8xf32> to vector<9x16x8xf32>
    %c0_10 = arith.constant 0 : index
    %c0_11 = arith.constant 0 : index
    %c0_12 = arith.constant 0 : index
    %40 = vector.load %arg5[%c0_10, %c0_11, %c0_12] : memref<9x16x8xf32, #tpu.memory_space<vmem>>, vector<9x16x8xf32>
    tpu.vector_store %arg5[%c0_10, %c0_11, %c0_12], %39 {strides = array<i32>} : memref<9x16x8xf32, #tpu.memory_space<vmem>>, vector<9x16x8xf32>,
    %c0_13 = arith.constant 0 : index
    %c0_14 = arith.constant 0 : index
    %c0_15 = arith.constant 0 : index
    %41 = tpu.strided_load %arg5[%c0_13, %c0_14, %c0_15] {strides = array<i32: 1, 2, 1>} : memref<9x16x8xf32, #tpu.memory_space<vmem>>, vector<9x8x8xf32>
    %c0_16 = arith.constant 0 : index
    %c1 = arith.constant 1 : index
    %c0_17 = arith.constant 0 : index
    %42 = tpu.strided_load %arg5[%c0_16, %c1, %c0_17] {strides = array<i32: 1, 2, 1>} : memref<9x16x8xf32, #tpu.memory_space<vmem>>, vector<9x8x8xf32>
    %cst_18 = arith.constant 0xFF800000 : f32
    %43 = vector.broadcast %cst_18 : f32 to vector<9x1x8xf32>
    %44 = tpu.concatenate %41, %43 in 1 : vector<9x8x8xf32>, vector<9x1x8xf32> -> vector<9x9x8xf32>
    %45 = tpu.concatenate %43, %42 in 1 : vector<9x1x8xf32>, vector<9x8x8xf32> -> vector<9x9x8xf32>
    %46 = arith.maximumf %44, %45 : vector<9x9x8xf32>
    %47 = vector.shape_cast %46 : vector<9x9x8xf32> to vector<1x9x9x8xf32>
    %c0_19 = arith.constant 0 : index
    %c0_20 = arith.constant 0 : index
    %c0_21 = arith.constant 0 : index
    %c0_22 = arith.constant 0 : index
    %48 = vector.load %arg4[%c0_19, %c0_20, %c0_21, %c0_22] : memref<1x9x9x8xf32, #tpu.memory_space<vmem>>, vector<1x9x9x8xf32>
    tpu.vector_store %arg4[%c0_19, %c0_20, %c0_21, %c0_22], %47 {strides = array<i32>} : memref<1x9x9x8xf32, #tpu.memory_space<vmem>>, vector<1x9x9x8xf32>,
    return
  }
  func.func @transform_0(%arg0: i32) -> (i32, i32, i32, i32) {
    %c0_i32 = arith.constant 0 : i32
    %c0_i32_0 = arith.constant 0 : i32
    %c0_i32_1 = arith.constant 0 : i32
    %c0_i32_2 = arith.constant 0 : i32
    return %arg0, %c0_i32, %c0_i32_0, %c0_i32_1 : i32, i32, i32, i32
  }
  func.func @transform_1(%arg0: i32) -> (i32, i32) {
    %c0_i32 = arith.constant 0 : i32
    %c0_i32_0 = arith.constant 0 : i32
    %c0_i32_1 = arith.constant 0 : i32
    return %c0_i32, %c0_i32_0 : i32, i32
  }
  func.func @transform_2(%arg0: i32) -> (i32, i32) {
    %c0_i32 = arith.constant 0 : i32
    %c0_i32_0 = arith.constant 0 : i32
    %c0_i32_1 = arith.constant 0 : i32
    return %c0_i32, %c0_i32_0 : i32, i32
  }
  func.func @transform_3(%arg0: i32) -> (i32, i32, i32, i32) {
    %c0_i32 = arith.constant 0 : i32
    %c0_i32_0 = arith.constant 0 : i32
    %c0_i32_1 = arith.constant 0 : i32
    %c0_i32_2 = arith.constant 0 : i32
    return %arg0, %c0_i32, %c0_i32_0, %c0_i32_1 : i32, i32, i32, i32
  }
}

</mosaic_0001>

<bundles_post_ra>
// kernel: tpu_custom_call.1
= control target key start
LH: loop header
LB: loop body
LE: loop exit
PB: predicated region body
PF: predicated region fallthrough
CT: control target
= control target key end

     0   :  { %s2157_s12 = smov 0   ;;  %s4142_s0 = inlined_call_operand.vmem [shape: f32[2,16,16,4], index: 0, kind: input, shape index: {}]   ;;  %s4143_s1 = inlined_call_operand.vmem [shape: f32[36,8], index: 1, kind: input, shape index: {}]   ;;  %s4144_s2 = inlined_call_operand.vmem [shape: f32[1,8], index: 2, kind: input, shape index: {}]   ;;  %s4145_s3 = inlined_call_operand.vmem [shape: f32[2,9,9,8], index: 3, kind: output, shape index: {}]  }
   0x1 LB: > { %s2017_s13 = sadd.s32 4294967295, %s2126_s12   ;;  %p2021_p0 = scmp.ge.s32.totalorder %s2126_s12, 1  ;;  %s2126_s12 = sphi %s2157_s12, %s13_s12  }
   0x2   : > { %p137_p1 = scmp.lt.s32.totalorder %s2126_s12, 3 }
   0x4   : > { %p138_p2 = pnand %p2021_p0, %p137_p1 }
   0x6   : > { %141 = sbr.rel (%p138_p2) target bundleno = 948 (0x3b4), region = 32 }
   0xb   : > { %vm236_vm0 = vcmask 1040384   ;;  %p161_p3 = scmp.lt.s32.totalorder %s2017_s13, 1  ;;  %v2128_v0 = vmov 0.0   ;;  %vm402_vm1 = vcmask 1046528   ;;  %s2129_s18 = smov 4   ;;  %vm483_vm2 = vcmask 1045504  }
   0xc   : > { %v2165_v1 = vrot.slane %v2128_v0, 7  ;;  %s2130_s19 = smov 8   ;;  %s2131_s20 = smov 12   ;;  %vm1344_vm3 = vcmask 31744   ;;  %vm1377_vm4 = vcmask 64512   ;;  %vm1410_vm5 = vcmask 97280  }
   0xd   : > { %s4653_s13 = smov (!%p161_p3, %s2017_s13), 1  ;;  %s2132_s21 = smov 16   ;;  %vm1443_vm6 = vcmask 130048   ;;  %vm1476_vm7 = vcmask 162816   ;;  %vm1509_vm8 = vcmask 195584   ;;  %vm1714_vm9 = vcmask 1043456  }
   0xe   : > { %4273 = vst [vmem:[#allocation3_spill] sm:$0xff] %v2165_v1  ;;  %v2171_v2 = vsel %vm236_vm0, 0.0, %v2165_v1  ;;  %v2175_v3 = vsel %vm236_vm0, %v2165_v1, 0.0  ;;  %v404_v4 = vrot.slane %v2165_v1, 1  ;;  %s2060_s14 = sshll.u32 %s4653_s13, 8  ;;  %s2133_s22 = smov 20  }
   0xf   : > { %4274 = vst [vmem:[#allocation4_spill] sm:$0xff] %v2171_v2  ;;  %v403_v5 = vrot.slane %v2171_v2, 1  ;;  %v406_v6 = vrot.slane %v2175_v3, 1  ;;  %s2184_s17 = scalar_lea.vmem %s4142_s0, %s2060_s14  ;;  %s2134_s23 = smov 24   ;;  %vm1542_vm10 = vcmask 228352   ;;  %vm1575_vm11 = vcmask 261120  }
  0x10   : > { %v173_v9 = vld [vmem:[%s2184_s17 + $0x10] sm:$0xff]  ;;  %v174_v10 = vld [vmem:[%s2184_s17 + $0x18] sm:$0xff]  ;;  %v171_v11 = vld [vmem:[%s2184_s17] sm:$0xff]  ;;  %s2135_s24 = smov 28   ;;  %s2136_s25 = smov 32   ;;  %vm1617_vm12 = vcmask 293888  }
  0x11   : > { %v405_v7 = vsel %vm402_vm1, %v403_v5, %v404_v4  ;;  %v407_v8 = vsel %vm402_vm1, %v404_v4, %v406_v6  ;;  %v242_v13 = vrot.slane %v173_v9, 7  ;;  %v243_v14 = vrot.slane %v174_v10, 7  ;;  %v172_v15 = vld [vmem:[%s2184_s17 + $0x8] sm:$0xff]  ;;  %v175_v16 = vld [vmem:[%s2184_s17 + $0x20] sm:$0xff]  ;;  %v177_v29 = vld [vmem:[%s2184_s17 + $0x30] sm:$0xff]  ;;  %s2076_s11 = smul.u32 144, %s4653_s13 }
  0x12   : > { %v2191_v12 = vpack.i.bf16 %v407_v8, %v405_v7  ;;  %v176_v17 = vld [vmem:[%s2184_s17 + $0x28] sm:$0xff]  ;;  %v239_v18 = vrot.slane %v171_v11, 7  ;;  %v240_v19 = vrot.slane %v172_v15, 7  ;;  %v245_v20 = vrot.slane %v175_v16, 7  ;;  %v178_v37 = vld [vmem:[%s2184_s17 + $0x38] sm:$0xff]  ;;  %v179_v46 = vld [vmem:[%s2184_s17 + $0x40] sm:$0xff] }
  0x13   : > { %v246_v21 = vrot.slane %v176_v17, 7  ;;  %v2199_v22 = vsel %vm236_vm0, %v242_v13, %v243_v14  ;;  %v2202_v23 = vsel %vm236_vm0, %v243_v14, 0.0  ;;  %v2205_v24 = vsel %vm236_vm0, 0.0, %v242_v13  ;;  %v180_v47 = vld [vmem:[%s2184_s17 + $0x48] sm:$0xff]  ;;  %v181_v56 = vld [vmem:[%s2184_s17 + $0x50] sm:$0xff]  ;;  %v182_v57 = vld [vmem:[%s2184_s17 + $0x58] sm:$0xff]  ;;  %s4000_s16 = scalar_lea.vmem %s4145_s3, %s2076_s11 }
  0x14   : > { %4275 = vst [vmem:[#allocation5_spill] sm:$0xff] %v2191_v12  ;;  %2095 = vrot.lane.b32.xlu0 %v2191_v12, %s2129_s18  ;;  %v414_v25 = vrot.slane %v2199_v22, 1  ;;  %v416_v26 = vrot.slane %v2202_v23, 1  ;;  %v2210_v27 = vsel %vm236_vm0, %v239_v18, %v240_v19  ;;  %v2213_v28 = vsel %vm236_vm0, %v240_v19, 0.0  ;;  %v183_v13 = vld [vmem:[%s2184_s17 + $0x60] sm:$0xff]  ;;  %v184_v14 = vld [vmem:[%s2184_s17 + $0x68] sm:$0xff] }
  0x15   : > { %4276 = vst [vmem:[#allocation6_spill] sm:$0xff] %v2199_v22  ;;  %v409_v30 = vrot.slane %v2210_v27, 1  ;;  %v411_v31 = vrot.slane %v2213_v28, 1  ;;  %v2219_v32 = vsel %vm236_vm0, 0.0, %v239_v18  ;;  %v2222_v33 = vsel %vm236_vm0, %v245_v20, %v246_v21 }
  0x16   : > { %4277 = vst [vmem:[#allocation7_spill] sm:$0xff] %v2205_v24  ;;  %v2225_v34 = vsel %vm402_vm1, %v414_v25, %v416_v26  ;;  %v408_v35 = vrot.slane %v2219_v32, 1  ;;  %v2229_v36 = vsel %vm236_vm0, 0.0, %v245_v20  ;;  %v248_v39 = vrot.slane %v177_v29, 7  ;;  %v186_v26 = vld [vmem:[%s2184_s17 + $0x78] sm:$0xff] }
  0x17   : > { %4278 = vst [vmem:[#allocation8_spill] sm:$0xff] %v2210_v27  ;;  %586 = vrot.lane.b32.xlu2 %v2225_v34, %s2129_s18  ;;  %v2235_v38 = vsel %vm402_vm1, %v409_v30, %v411_v31  ;;  %v418_v41 = vrot.slane %v2229_v36, 1  ;;  %v419_v42 = vrot.slane %v2222_v33, 1  ;;  %v413_v43 = vrot.slane %v2205_v24, 1 }
  0x18   : > { %4279 = vst [vmem:[#allocation9_spill] sm:$0xff] %v2219_v32  ;;  %582 = vrot.lane.b32.xlu1 %v2235_v38, %s2129_s18  ;;  %v2240_v40 = vsel %vm402_vm1, %v408_v35, %v409_v30  ;;  %v2246_v44 = vsel %vm236_vm0, %v246_v21, 0.0  ;;  %v249_v45 = vrot.slane %v178_v37, 7  ;;  %v2260_v51 = vsel %vm236_vm0, 0.0, %v248_v39 }
  0x19   : > { %4280 = vst [vmem:[#allocation10_spill] sm:$0xff] %v2222_v33  ;;  %v2253_v48 = vsel %vm402_vm1, %v418_v41, %v419_v42  ;;  %v2256_v49 = vsel %vm402_vm1, %v413_v43, %v414_v25  ;;  %v421_v50 = vrot.slane %v2246_v44, 1  ;;  %v251_v54 = vrot.slane %v179_v46, 7  ;;  %v185_v25 = vld [vmem:[%s2184_s17 + $0x70] sm:$0xff] }
  0x1a   : > { %4281 = vst [vmem:[#allocation11_spill] sm:$0xff] %v2225_v34  ;;  %v2263_v52 = vsel %vm236_vm0, %v248_v39, %v249_v45  ;;  %v2266_v53 = vsel %vm236_vm0, %v249_v45, 0.0  ;;  %v252_v55 = vrot.slane %v180_v47, 7  ;;  %v423_v61 = vrot.slane %v2260_v51, 1  ;;  %v188_v45 = vld [vmem:[%s2184_s17 + $0x88] sm:$0xff] }
  0x1b   : > { %4282 = vst [vmem:[#allocation12_spill] sm:$0xff] %v2253_v48  ;;  %v2275_v58 = vsel %vm402_vm1, %v419_v42, %v421_v50  ;;  %v424_v59 = vrot.slane %v2263_v52, 1  ;;  %v426_v60 = vrot.slane %v2266_v53, 1  ;;  %v2284_v63 = vsel %vm236_vm0, 0.0, %v251_v54  ;;  %v187_v42 = vld [vmem:[%s2184_s17 + $0x80] sm:$0xff] }
  0x1c   : > { %580 = vrot.lane.b32.xlu0 %v2240_v40, %s2129_s18  ;;  %4283 = vst [vmem:[#allocation13_spill] sm:$0xff] %v2260_v51  ;;  %v2281_v62 = vsel %vm236_vm0, %v251_v54, %v252_v55  ;;  %v254_v0 = vrot.slane %v181_v56, 7  ;;  %v255_v4 = vrot.slane %v182_v57, 7  ;;  %v428_v6 = vrot.slane %v2284_v63, 1 }
  0x1d   : > { %4284 = vst [vmem:[#allocation14_spill] sm:$0xff] %v2263_v52  ;;  %v2289_v5 = vsel %vm402_vm1, %v424_v59, %v426_v60  ;;  %v429_v7 = vrot.slane %v2281_v62, 1  ;;  %v2294_v8 = vsel %vm402_vm1, %v423_v61, %v424_v59  ;;  %v2303_v11 = vsel %vm236_vm0, %v252_v55, 0.0 }
  0x1e   : > { %4285 = vst [vmem:[#allocation15_spill] sm:$0xff] %v2275_v58  ;;  %v2297_v9 = vsel %vm236_vm0, %v254_v0, %v255_v4  ;;  %v2300_v10 = vsel %vm236_vm0, 0.0, %v254_v0  ;;  %v431_v18 = vrot.slane %v2303_v11, 1  ;;  %v2318_v19 = vsel %vm236_vm0, %v255_v4, 0.0 }
  0x1f   : > { %588 = vrot.lane.b32.xlu2 %v2253_v48, %s2129_s18  ;;  %4286 = vst [vmem:[#allocation16_spill] sm:$0xff] %v2289_v5  ;;  %v2312_v15 = vsel %vm402_vm1, %v428_v6, %v429_v7  ;;  %v433_v16 = vrot.slane %v2300_v10, 1  ;;  %v434_v17 = vrot.slane %v2297_v9, 1  ;;  %v257_v20 = vrot.slane %v183_v13, 7 }
  0x20   : > { %584 = vrot.lane.b32.xlu1 %v2256_v49, %s2129_s18  ;;  %4287 = vst [vmem:[#allocation17_spill] sm:$0xff] %v2294_v8  ;;  %v258_v21 = vrot.slane %v184_v14, 7  ;;  %v2328_v30 = vsel %vm402_vm1, %v429_v7, %v431_v18  ;;  %v436_v31 = vrot.slane %v2318_v19, 1  ;;  %v260_v39 = vrot.slane %v185_v25, 7  ;;  %v189_v14 = vld [vmem:[%s2184_s17 + $0x90] sm:$0xff] }
  0x21   : > { %4288 = vst [vmem:[#allocation18_spill] sm:$0xff] %v2312_v15  ;;  %v2325_v29 = vsel %vm402_vm1, %v433_v16, %v434_v17  ;;  %v261_v41 = vrot.slane %v186_v26, 7  ;;  %v2339_v43 = vsel %vm236_vm0, 0.0, %v257_v20  ;;  %v263_v54 = vrot.slane %v187_v42, 7  ;;  %v190_v16 = vld [vmem:[%s2184_s17 + $0x98] sm:$0xff] }
  0x22   : > { %4289 = vst [vmem:[#allocation19_spill] sm:$0xff] %v2325_v29  ;;  %v2332_v35 = vsel %vm236_vm0, %v257_v20, %v258_v21  ;;  %v2335_v37 = vsel %vm236_vm0, %v258_v21, 0.0  ;;  %v2347_v46 = vsel %vm402_vm1, %v434_v17, %v436_v31  ;;  %v438_v55 = vrot.slane %v2339_v43, 1 }
  0x23   : > { %4290 = vst [vmem:[#allocation20_spill] sm:$0xff] %v2328_v30  ;;  %v439_v47 = vrot.slane %v2332_v35, 1  ;;  %v441_v50 = vrot.slane %v2335_v37, 1  ;;  %v2353_v56 = vsel %vm236_vm0, %v260_v39, %v261_v41  ;;  %v2356_v57 = vsel %vm236_vm0, 0.0, %v260_v39  ;;  %v191_v39 = vld [vmem:[%s2184_s17 + $0xa0] sm:$0xff] }
  0x24   : > { %590 = vrot.lane.b32.xlu0 %v2275_v58, %s2129_s18  ;;  %4291 = vst [vmem:[#allocation21_spill] sm:$0xff] %v2347_v46  ;;  %v264_v59 = vrot.slane %v188_v45, 7  ;;  %v443_v61 = vrot.slane %v2356_v57, 1  ;;  %v444_v0 = vrot.slane %v2353_v56, 1  ;;  %v2372_v7 = vsel %vm236_vm0, 0.0, %v263_v54 }
  0x25   : > { %v2361_v60 = vsel %vm402_vm1, %v439_v47, %v441_v50  ;;  %v2366_v4 = vsel %vm402_vm1, %v438_v55, %v439_v47  ;;  %4295 = vst [vmem:[#allocation25_spill] sm:$0xff] %v2372_v7  ;;  %v2375_v13 = vsel %vm236_vm0, %v261_v41, 0.0  ;;  %v448_v18 = vrot.slane %v2372_v7, 1  ;;  %v192_v41 = vld [vmem:[%s2184_s17 + $0xa8] sm:$0xff] }
  0x26   : > { %4292 = vst [vmem:[#allocation22_spill] sm:$0xff] %v2361_v60  ;;  %v2369_v6 = vsel %vm236_vm0, %v263_v54, %v264_v59  ;;  %v2384_v17 = vsel %vm402_vm1, %v443_v61, %v444_v0  ;;  %v2389_v21 = vsel %vm236_vm0, %v264_v59, 0.0  ;;  %v446_v25 = vrot.slane %v2375_v13, 1 }
  0x27   : > { %594 = vrot.lane.b32.xlu2 %v2289_v5, %s2129_s18  ;;  %4293 = vst [vmem:[#allocation23_spill] sm:$0xff] %v2366_v4  ;;  %v449_v20 = vrot.slane %v2369_v6, 1  ;;  %v266_v26 = vrot.slane %v189_v14, 7  ;;  %v267_v31 = vrot.slane %v190_v16, 7  ;;  %v451_v42 = vrot.slane %v2389_v21, 1  ;;  %v193_v14 = vld [vmem:[%s2184_s17 + $0xb0] sm:$0xff] }
  0x28   : > { %592 = vrot.lane.b32.xlu1 %v2294_v8, %s2129_s18  ;;  %4294 = vst [vmem:[#allocation24_spill] sm:$0xff] %v2369_v6  ;;  %v269_v47 = vrot.slane %v191_v39, 7  ;;  %v270_v50 = vrot.slane %v192_v41, 7  ;;  %v2401_v54 = vsel %vm402_vm1, %v444_v0, %v446_v25  ;;  %v194_v16 = vld [vmem:[%s2184_s17 + $0xb8] sm:$0xff]  ;;  %v272_v41 = vrot.slane %v193_v14, 7 }
  0x29   : > { %4296 = vst [vmem:[#allocation26_spill] sm:$0xff] %v2384_v17  ;;  %v2398_v45 = vsel %vm402_vm1, %v448_v18, %v449_v20  ;;  %v2404_v55 = vsel %vm236_vm0, %v266_v26, %v267_v31  ;;  %v2407_v59 = vsel %vm236_vm0, %v267_v31, 0.0  ;;  %v2410_v61 = vsel %vm236_vm0, 0.0, %v266_v26 }
  0x2a   : > { %4297 = vst [vmem:[#allocation27_spill] sm:$0xff] %v2398_v45  ;;  %v2417_v18 = vsel %vm402_vm1, %v449_v20, %v451_v42  ;;  %v454_v0 = vrot.slane %v2404_v55, 1  ;;  %v456_v25 = vrot.slane %v2407_v59, 1  ;;  %v2424_v31 = vsel %vm236_vm0, %v269_v47, %v270_v50 }
  0x2b   : > { %4298 = vst [vmem:[#allocation28_spill] sm:$0xff] %v2401_v54  ;;  %v2427_v26 = vsel %vm236_vm0, 0.0, %v269_v47  ;;  %v453_v39 = vrot.slane %v2410_v61, 1  ;;  %v273_v20 = vrot.slane %v194_v16, 7  ;;  %v487_v42 = vrot.slane %v2175_v3, 2 }
  0x2c   : > { %596 = vrot.lane.b32.xlu0 %v2312_v15, %s2129_s18  ;;  %4299 = vst [vmem:[#allocation29_spill] sm:$0xff] %v2417_v18  ;;  %v458_v12 = vrot.slane %v2427_v26, 1  ;;  %v2439_v47 = vsel %vm236_vm0, %v270_v50, 0.0  ;;  %v485_v14 = vrot.slane %v2165_v1, 2  ;;  %vm1944_vm13 = vcmask 57344  }
  0x2d   : > { %4300 = vst [vmem:[#allocation30_spill] sm:$0xff] %v2427_v26  ;;  %v2444_v3 = vsel %vm402_vm1, %v453_v39, %v454_v0  ;;  %v2447_v16 = vsel %vm236_vm0, %v272_v41, %v273_v20  ;;  %v461_v39 = vrot.slane %v2439_v47, 1 }
  0x2e   : > { %4302 = vst [vmem:[#allocation32_spill] sm:$0xff] %v2444_v3 }
  0x2f   : > { %600 = vrot.lane.b32.xlu2 %v2325_v29, %s2129_s18  ;;  %4303 = vst [vmem:[#allocation33_spill] sm:$0xff] %v2447_v16  ;;  %v200_v29 = vld [vmem:[%s2184_s17 + $0xe8] sm:$0xff] }
  0x30   : > { %598 = vrot.lane.b32.xlu1 %v2328_v30, %s2129_s18 }
  0x34   : > { %602 = vrot.lane.b32.xlu0 %v2347_v46, %s2129_s18 }
  0x37   : > { %606 = vrot.lane.b32.xlu2 %v2361_v60, %s2129_s18  ;;  %v488_v60 = vsel %vm483_vm2, %v485_v14, %v487_v42 }
  0x38   : > { %604 = vrot.lane.b32.xlu1 %v2366_v4, %s2129_s18  ;;  %v196_v4 = vld [vmem:[%s2184_s17 + $0xc8] sm:$0xff] }
  0x3c   : > { %608 = vrot.lane.b32.xlu0 %v2384_v17, %s2129_s18  ;;  %v484_v17 = vrot.slane %v2171_v2, 2  ;;  %v2469_v2 = vsel %vm236_vm0, %v273_v20, 0.0 }
  0x3e   : > { %v486_v50 = vsel %vm483_vm2, %v484_v17, %v485_v14  ;;  %v464_v17 = vrot.slane %v2447_v16, 1  ;;  %v276_v14 = vrot.slane %v196_v4, 7 }
  0x3f   : > { %612 = vrot.lane.b32.xlu2 %v2398_v45, %s2129_s18  ;;  %v2436_v45 = vsel %vm402_vm1, %v454_v0, %v456_v25  ;;  %v195_v25 = vld [vmem:[%s2184_s17 + $0xc0] sm:$0xff]  ;;  %v2462_v1 = vpack.i.bf16 %v488_v60, %v486_v50 }
  0x40   : > { %610 = vrot.lane.b32.xlu1 %v2401_v54, %s2129_s18  ;;  %v459_v54 = vrot.slane %v2424_v31, 1  ;;  %4301 = vst [vmem:[#allocation31_spill] sm:$0xff] %v2436_v45  ;;  %v275_v42 = vrot.slane %v195_v25, 7  ;;  %v2486_v4 = vsel %vm236_vm0, %v276_v14, 0.0 }
  0x41   : > { %4306 = vst [vmem:[#allocation36_spill] sm:$0xff] %v2462_v1 }
  0x42   : > { %v2459_v0 = vsel %vm402_vm1, %v458_v12, %v459_v54  ;;  %v197_v12 = vld [vmem:[%s2184_s17 + $0xd0] sm:$0xff]  ;;  %v2479_v50 = vsel %vm402_vm1, %v459_v54, %v461_v39  ;;  %v2483_v46 = vsel %vm236_vm0, %v275_v42, %v276_v14  ;;  %v2489_v20 = vsel %vm236_vm0, 0.0, %v275_v42 }
  0x43   : > { %4305 = vst [vmem:[#allocation35_spill] sm:$0xff] %v2459_v0  ;;  %v278_v25 = vrot.slane %v197_v12, 7  ;;  %v469_v39 = vrot.slane %v2483_v46, 1  ;;  %v468_v42 = vrot.slane %v2489_v20, 1 }
  0x44   : > { %614 = vrot.lane.b32.xlu0 %v2417_v18, %s2129_s18  ;;  %v2450_v18 = vsel %vm236_vm0, 0.0, %v272_v41  ;;  %4308 = vst [vmem:[#allocation38_spill] sm:$0xff] %v2479_v50 }
  0x45   : > { %4304 = vst [vmem:[#allocation34_spill] sm:$0xff] %v2450_v18  ;;  %v463_v41 = vrot.slane %v2450_v18, 1  ;;  %v2517_v15 = vsel %vm402_vm1, %v468_v42, %v469_v39 }
  0x46   : > { %4309 = vst [vmem:[#allocation39_spill] sm:$0xff] %v2483_v46 }
  0x47   : > { %618 = vrot.lane.b32.xlu2 %v2436_v45, %s2129_s18  ;;  %v198_v45 = vld [vmem:[%s2184_s17 + $0xd8] sm:$0xff]  ;;  %v2476_v60 = vsel %vm402_vm1, %v463_v41, %v464_v17  ;;  %4310 = vst [vmem:[#allocation40_spill] sm:$0xff] %v2489_v20  ;;  %v471_v41 = vrot.slane %v2486_v4, 1 }
  0x48   : > { %616 = vrot.lane.b32.xlu1 %v2444_v3, %s2129_s18  ;;  %4307 = vst [vmem:[#allocation37_spill] sm:$0xff] %v2476_v60  ;;  %v466_v3 = vrot.slane %v2469_v2, 1  ;;  %v279_v30 = vrot.slane %v198_v45, 7  ;;  %v2507_v45 = vsel %vm236_vm0, 0.0, %v278_v25 }
  0x49   : > { %4314 = vst [vmem:[#allocation44_spill] sm:$0xff] %v2517_v15 }
  0x4a   : > { %v2498_v54 = vsel %vm402_vm1, %v464_v17, %v466_v3  ;;  %v2504_v14 = vsel %vm236_vm0, %v278_v25, %v279_v30  ;;  %v2512_v3 = vsel %vm402_vm1, %v469_v39, %v471_v41  ;;  %v473_v17 = vrot.slane %v2507_v45, 1 }
  0x4b   : > { %4311 = vst [vmem:[#allocation41_spill] sm:$0xff] %v2498_v54 }
  0x4c   : > { %620 = vrot.lane.b32.xlu0 %v2459_v0, %s2129_s18  ;;  %v199_v0 = vld [vmem:[%s2184_s17 + $0xe0] sm:$0xff]  ;;  %4312 = vst [vmem:[#allocation42_spill] sm:$0xff] %v2504_v14 }
  0x4d   : > { %v281_v12 = vrot.slane %v199_v0, 7  ;;  %4313 = vst [vmem:[#allocation43_spill] sm:$0xff] %v2512_v3 }
  0x4f   : > { %624 = vrot.lane.b32.xlu2 %v2476_v60, %s2129_s18  ;;  %v282_v60 = vrot.slane %v200_v29, 7  ;;  %v2523_v25 = vsel %vm236_vm0, 0.0, %v281_v12  ;;  %v2526_v29 = vsel %vm236_vm0, %v279_v30, 0.0 }
  0x50   : > { %622 = vrot.lane.b32.xlu1 %v2479_v50, %s2129_s18  ;;  %v474_v50 = vrot.slane %v2504_v14, 1  ;;  %4316 = vst [vmem:[#allocation46_spill] sm:$0xff] %v2523_v25  ;;  %v478_v39 = vrot.slane %v2523_v25, 1  ;;  %v476_v42 = vrot.slane %v2526_v29, 1 }
  0x51   : > { %v2520_v8 = vsel %vm236_vm0, %v281_v12, %v282_v60  ;;  %v2539_v12 = vsel %vm236_vm0, %v282_v60, 0.0 }
  0x52   : > { %4315 = vst [vmem:[#allocation45_spill] sm:$0xff] %v2520_v8  ;;  %v2533_v0 = vsel %vm402_vm1, %v473_v17, %v474_v50  ;;  %v479_v41 = vrot.slane %v2520_v8, 1  ;;  %v2548_v17 = vsel %vm402_vm1, %v474_v50, %v476_v42  ;;  %v492_v50 = vrot.slane %v2213_v28, 2 }
  0x53   : > { %4317 = vst [vmem:[#allocation47_spill] sm:$0xff] %v2533_v0  ;;  %v497_v42 = vrot.slane %v2202_v23, 2 }
  0x54   : > { %626 = vrot.lane.b32.xlu0 %v2498_v54, %s2129_s18  ;;  %v2544_v30 = vsel %vm402_vm1, %v478_v39, %v479_v41  ;;  %4319 = vst [vmem:[#allocation49_spill] sm:$0xff] %v2548_v17 }
  0x55   : > { %4318 = vst [vmem:[#allocation48_spill] sm:$0xff] %v2544_v30 }
  0x57   : > { %630 = vrot.lane.b32.xlu2 %v2512_v3, %s2129_s18  ;;  %v489_v3 = vrot.slane %v2219_v32, 2 }
  0x58   : > { %628 = vrot.lane.b32.xlu1 %v2517_v15, %s2129_s18  ;;  %v481_v15 = vrot.slane %v2539_v12, 1 }
  0x5a   : > { %v2555_v60 = vsel %vm402_vm1, %v479_v41, %v481_v15  ;;  %v495_v41 = vrot.slane %v2199_v22, 2 }
  0x5b   : > { %4320 = vst [vmem:[#allocation50_spill] sm:$0xff] %v2555_v60 }
  0x5c   : > { %632 = vrot.lane.b32.xlu0 %v2533_v0, %s2129_s18  ;;  %v490_v0 = vrot.slane %v2210_v27, 2  ;;  %v2578_v28 = vsel %vm483_vm2, %v495_v41, %v497_v42 }
  0x5d   : > { %4323 = vst [vmem:[#allocation53_spill] sm:$0xff] %v2578_v28 }
  0x5e   : > { %v2562_v39 = vsel %vm483_vm2, %v489_v3, %v490_v0  ;;  %v2570_v15 = vsel %vm483_vm2, %v490_v0, %v492_v50  ;;  %v499_v3 = vrot.slane %v2229_v36, 2  ;;  %v504_v0 = vrot.slane %v2260_v51, 2 }
  0x5f   : > { %636 = vrot.lane.b32.xlu2 %v2544_v30, %s2129_s18  ;;  %4321 = vst [vmem:[#allocation51_spill] sm:$0xff] %v2562_v39  ;;  %v505_v50 = vrot.slane %v2263_v52, 2 }
  0x60   : > { %634 = vrot.lane.b32.xlu1 %v2548_v17, %s2129_s18  ;;  %4322 = vst [vmem:[#allocation52_spill] sm:$0xff] %v2570_v15 }
  0x64   : > { %638 = vrot.lane.b32.xlu0 %v2555_v60, %s2129_s18  ;;  %v494_v60 = vrot.slane %v2205_v24, 2 }
  0x67   : > { %676 = vrot.lane.b32.xlu2 %v2562_v39, %s2130_s19  ;;  %v500_v39 = vrot.slane %v2222_v33, 2 }
  0x68   : > { %2100 = vrot.lane.b32.xlu1 %v2462_v1, %s2130_s19  ;;  %v2583_v1 = vsel %vm483_vm2, %v494_v60, %v495_v41  ;;  %v2600_v60 = vsel %vm483_vm2, %v504_v0, %v505_v50  ;;  %v507_v41 = vrot.slane %v2266_v53, 2  ;;  %v509_v53 = vrot.slane %v2284_v63, 2 }
  0x69   : > { %v2590_v23 = vsel %vm483_vm2, %v499_v3, %v500_v39  ;;  %4326 = vst [vmem:[#allocation56_spill] sm:$0xff] %v2600_v60 }
  0x6a   : > { %4324 = vst [vmem:[#allocation54_spill] sm:$0xff] %v2590_v23  ;;  %v2611_v3 = vsel %vm483_vm2, %v505_v50, %v507_v41  ;;  %v519_v41 = vrot.slane %v2339_v43, 2 }
  0x6b   : > { %4328 = vst [vmem:[#allocation58_spill] sm:$0xff] %v2611_v3 }
  0x6c   : > { %678 = vrot.lane.b32.xlu0 %v2570_v15, %s2130_s19  ;;  %v502_v15 = vrot.slane %v2246_v44, 2  ;;  %v510_v44 = vrot.slane %v2281_v62, 2 }
  0x6e   : > { %v2626_v50 = vsel %vm483_vm2, %v509_v53, %v510_v44  ;;  %v522_v53 = vrot.slane %v2335_v37, 2  ;;  %v524_v37 = vrot.slane %v2356_v57, 2 }
  0x6f   : > { %682 = vrot.lane.b32.xlu2 %v2578_v28, %s2130_s19  ;;  %v2604_v28 = vsel %vm483_vm2, %v500_v39, %v502_v15  ;;  %v514_v15 = vrot.slane %v2300_v10, 2  ;;  %4331 = vst [vmem:[#allocation61_spill] sm:$0xff] %v2626_v50 }
  0x70   : > { %680 = vrot.lane.b32.xlu1 %v2583_v1, %s2130_s19  ;;  %4327 = vst [vmem:[#allocation57_spill] sm:$0xff] %v2604_v28 }
  0x71   : > { %v2594_v42 = vpop.permute.xlu2 %586 }
  0x72   : > { %4325 = vst [vmem:[#allocation55_spill] sm:$0xff] %v2594_v42  ;;  %v512_v42 = vrot.slane %v2303_v11, 2 }
  0x74   : > { %684 = vrot.lane.b32.xlu0 %v2590_v23, %s2130_s19  ;;  %v2621_v39 = vsel %vm483_vm2, %v510_v44, %v512_v42  ;;  %v520_v42 = vrot.slane %v2332_v35, 2 }
  0x75   : > { %4330 = vst [vmem:[#allocation60_spill] sm:$0xff] %v2621_v39 }
  0x76   : > { %v2643_v44 = vsel %vm483_vm2, %v519_v41, %v520_v42  ;;  %v527_v41 = vrot.slane %v2375_v13, 2 }
  0x77   : > { %688 = vrot.lane.b32.xlu2 %v2600_v60, %s2130_s19  ;;  %v515_v60 = vrot.slane %v2297_v9, 2  ;;  %4334 = vst [vmem:[#allocation64_spill] sm:$0xff] %v2643_v44 }
  0x78   : > { %686 = vrot.lane.b32.xlu1 %v2604_v28, %s2130_s19 }
  0x79   : > { %v2615_v0 = vpop.permute.xlu2 %588  ;;  %v2633_v11 = vsel %vm483_vm2, %v514_v15, %v515_v60 }
  0x7a   : > { %4329 = vst [vmem:[#allocation59_spill] sm:$0xff] %v2615_v0 }
  0x7b   : > { %4332 = vst [vmem:[#allocation62_spill] sm:$0xff] %v2633_v11 }
  0x7c   : > { %690 = vrot.lane.b32.xlu0 %v2611_v3, %s2130_s19  ;;  %v517_v3 = vrot.slane %v2318_v19, 2  ;;  %v2656_v19 = vsel %vm483_vm2, %v520_v42, %v522_v53  ;;  %v530_v42 = vrot.slane %v2369_v6, 2 }
  0x7d   : > { %4337 = vst [vmem:[#allocation67_spill] sm:$0xff] %v2656_v19 }
  0x7e   : > { %v2649_v15 = vsel %vm483_vm2, %v515_v60, %v517_v3  ;;  %v529_v3 = vrot.slane %v2372_v7, 2 }
  0x7f   : > { %694 = vrot.lane.b32.xlu2 %v2621_v39, %s2130_s19  ;;  %4336 = vst [vmem:[#allocation66_spill] sm:$0xff] %v2649_v15 }
  0x80   : > { %692 = vrot.lane.b32.xlu1 %v2626_v50, %s2130_s19 }
  0x81   : > { %v2637_v0 = vpop.permute.xlu2 %594 }
  0x82   : > { %4333 = vst [vmem:[#allocation63_spill] sm:$0xff] %v2637_v0  ;;  %v525_v0 = vrot.slane %v2353_v56, 2 }
  0x84   : > { %696 = vrot.lane.b32.xlu0 %v2633_v11, %s2130_s19  ;;  %v2668_v60 = vsel %vm483_vm2, %v525_v0, %v527_v41  ;;  %v2675_v13 = vsel %vm483_vm2, %v524_v37, %v525_v0  ;;  %v534_v41 = vrot.slane %v2410_v61, 2  ;;  %v537_v37 = vrot.slane %v2407_v59, 2 }
  0x85   : > { %4340 = vst [vmem:[#allocation70_spill] sm:$0xff] %v2668_v60  ;;  %v539_v59 = vrot.slane %v2427_v26, 2 }
  0x86   : > { %v2646_v39 = vpop.permute.xlu0 %2095  ;;  %4342 = vst [vmem:[#allocation72_spill] sm:$0xff] %v2675_v13 }
  0x87   : > { %4335 = vst [vmem:[#allocation65_spill] sm:$0xff] %v2646_v39  ;;  %700 = vrot.lane.b32.xlu2 %v2643_v44, %s2130_s19 }
  0x88   : > { %698 = vrot.lane.b32.xlu1 %v2649_v15, %s2130_s19 }
  0x89   : > { %v2660_v11 = vpop.permute.xlu2 %600 }
  0x8a   : > { %4338 = vst [vmem:[#allocation68_spill] sm:$0xff] %v2660_v11  ;;  %v2663_v39 = vpop.permute.xlu1 %582  ;;  %v535_v11 = vrot.slane %v2404_v55, 2 }
  0x8b   : > { %4339 = vst [vmem:[#allocation69_spill] sm:$0xff] %v2663_v39  ;;  %v2682_v39 = vsel %vm483_vm2, %v529_v3, %v530_v42 }
  0x8c   : > { %702 = vrot.lane.b32.xlu0 %v2656_v19, %s2130_s19  ;;  %4343 = vst [vmem:[#allocation73_spill] sm:$0xff] %v2682_v39  ;;  %v2694_v0 = vsel %vm483_vm2, %v534_v41, %v535_v11  ;;  %v542_v41 = vrot.slane %v2439_v47, 2 }
  0x8d   : > { %4346 = vst [vmem:[#allocation76_spill] sm:$0xff] %v2694_v0 }
  0x8e   : > { %v2672_v53 = vpop.permute.xlu0 %580 }
  0x8f   : > { %4341 = vst [vmem:[#allocation71_spill] sm:$0xff] %v2672_v53  ;;  %706 = vrot.lane.b32.xlu2 %v2668_v60, %s2130_s19  ;;  %v532_v53 = vrot.slane %v2389_v21, 2  ;;  %v2707_v21 = vsel %vm483_vm2, %v535_v11, %v537_v37  ;;  %v545_v11 = vrot.slane %v2447_v16, 2 }
  0x90   : > { %704 = vrot.lane.b32.xlu1 %v2675_v13, %s2130_s19  ;;  %4349 = vst [vmem:[#allocation79_spill] sm:$0xff] %v2707_v21 }
  0x91   : > { %v2686_v19 = vpop.permute.xlu2 %606  ;;  %v2700_v60 = vsel %vm483_vm2, %v530_v42, %v532_v53  ;;  %v544_v53 = vrot.slane %v2450_v18, 2 }
  0x92   : > { %4344 = vst [vmem:[#allocation74_spill] sm:$0xff] %v2686_v19  ;;  %v2689_v44 = vpop.permute.xlu1 %584 }
  0x93   : > { %4345 = vst [vmem:[#allocation75_spill] sm:$0xff] %v2689_v44  ;;  %v540_v44 = vrot.slane %v2424_v31, 2 }
  0x94   : > { %708 = vrot.lane.b32.xlu0 %v2682_v39, %s2130_s19  ;;  %4348 = vst [vmem:[#allocation78_spill] sm:$0xff] %v2700_v60 }
  0x95   : > { %v2719_v42 = vsel %vm483_vm2, %v540_v44, %v542_v41  ;;  %v2726_v47 = vsel %vm483_vm2, %v539_v59, %v540_v44  ;;  %v549_v41 = vrot.slane %v2489_v20, 2  ;;  %v552_v59 = vrot.slane %v2486_v4, 2 }
  0x96   : > { %v2697_v3 = vpop.permute.xlu0 %590  ;;  %4352 = vst [vmem:[#allocation82_spill] sm:$0xff] %v2719_v42  ;;  %v554_v4 = vrot.slane %v2507_v45, 2 }
  0x97   : > { %4347 = vst [vmem:[#allocation77_spill] sm:$0xff] %v2697_v3  ;;  %712 = vrot.lane.b32.xlu2 %v2694_v0, %s2130_s19 }
  0x98   : > { %710 = vrot.lane.b32.xlu1 %v2700_v60, %s2130_s19  ;;  %4354 = vst [vmem:[#allocation84_spill] sm:$0xff] %v2726_v47 }
  0x99   : > { %v2711_v19 = vpop.permute.xlu2 %612 }
  0x9a   : > { %4350 = vst [vmem:[#allocation80_spill] sm:$0xff] %v2711_v19  ;;  %v2714_v3 = vpop.permute.xlu1 %592  ;;  %v550_v19 = vrot.slane %v2483_v46, 2 }
  0x9b   : > { %4351 = vst [vmem:[#allocation81_spill] sm:$0xff] %v2714_v3  ;;  %v2733_v3 = vsel %vm483_vm2, %v544_v53, %v545_v11 }
  0x9c   : > { %714 = vrot.lane.b32.xlu0 %v2707_v21, %s2130_s19  ;;  %4355 = vst [vmem:[#allocation85_spill] sm:$0xff] %v2733_v3  ;;  %v2745_v44 = vsel %vm483_vm2, %v549_v41, %v550_v19  ;;  %v557_v41 = vrot.slane %v2526_v29, 2 }
  0x9d   : > { %4358 = vst [vmem:[#allocation88_spill] sm:$0xff] %v2745_v44 }
  0x9e   : > { %v2723_v37 = vpop.permute.xlu0 %596 }
  0x9f   : > { %4353 = vst [vmem:[#allocation83_spill] sm:$0xff] %v2723_v37  ;;  %718 = vrot.lane.b32.xlu2 %v2719_v42, %s2130_s19  ;;  %v547_v37 = vrot.slane %v2469_v2, 2  ;;  %v2758_v2 = vsel %vm483_vm2, %v550_v19, %v552_v59  ;;  %v560_v19 = vrot.slane %v2520_v8, 2 }
  0xa0   : > { %716 = vrot.lane.b32.xlu1 %v2726_v47, %s2130_s19  ;;  %4361 = vst [vmem:[#allocation91_spill] sm:$0xff] %v2758_v2 }
  0xa1   : > { %v2737_v21 = vpop.permute.xlu2 %618  ;;  %v2751_v42 = vsel %vm483_vm2, %v545_v11, %v547_v37  ;;  %v559_v37 = vrot.slane %v2523_v25, 2 }
  0xa2   : > { %4356 = vst [vmem:[#allocation86_spill] sm:$0xff] %v2737_v21  ;;  %v2740_v0 = vpop.permute.xlu1 %598  ;;  %v555_v21 = vrot.slane %v2504_v14, 2 }
  0xa3   : > { %4357 = vst [vmem:[#allocation87_spill] sm:$0xff] %v2740_v0 }
  0xa4   : > { %720 = vrot.lane.b32.xlu0 %v2733_v3, %s2130_s19  ;;  %4360 = vst [vmem:[#allocation90_spill] sm:$0xff] %v2751_v42  ;;  %v2770_v11 = vsel %vm483_vm2, %v555_v21, %v557_v41  ;;  %v2777_v29 = vsel %vm483_vm2, %v554_v4, %v555_v21 }
  0xa6   : > { %v2748_v53 = vpop.permute.xlu0 %602 }
  0xa7   : > { %4359 = vst [vmem:[#allocation89_spill] sm:$0xff] %v2748_v53  ;;  %724 = vrot.lane.b32.xlu2 %v2745_v44, %s2130_s19 }
  0xa8   : > { %722 = vrot.lane.b32.xlu1 %v2751_v42, %s2130_s19 }
  0xa9   : > { %v2762_v0 = vpop.permute.xlu2 %624 }
  0xaa   : > { %4362 = vst [vmem:[#allocation92_spill] sm:$0xff] %v2762_v0  ;;  %v2765_v53 = vpop.permute.xlu1 %604  ;;  %v2784_v0 = vsel %vm483_vm2, %v559_v37, %v560_v19 }
  0xab   : > { %4363 = vst [vmem:[#allocation93_spill] sm:$0xff] %v2765_v53  ;;  %v562_v53 = vrot.slane %v2539_v12, 2 }
  0xac   : > { %726 = vrot.lane.b32.xlu0 %v2758_v2, %s2130_s19 }
  0xad   : > { %v2796_v4 = vsel %vm483_vm2, %v560_v19, %v562_v53 }
  0xae   : > { %v2774_v59 = vpop.permute.xlu0 %608  ;;  %4367 = vst [vmem:[#allocation97_spill] sm:$0xff] %v2796_v4 }
  0xaf   : > { %4364 = vst [vmem:[#allocation94_spill] sm:$0xff] %v2774_v59  ;;  %730 = vrot.lane.b32.xlu2 %v2770_v11, %s2130_s19 }
  0xb0   : > { %728 = vrot.lane.b32.xlu1 %v2777_v29, %s2130_s19 }
  0xb1   : > { %v2786_v41 = vpop.permute.xlu2 %630 }
  0xb2   : > { %4365 = vst [vmem:[#allocation95_spill] sm:$0xff] %v2786_v41  ;;  %v2789_v2 = vpop.permute.xlu1 %610 }
  0xb4   : > { %732 = vrot.lane.b32.xlu0 %v2784_v0, %s2130_s19 }
  0xb6   : > { %v2793_v21 = vpop.permute.xlu0 %614 }
  0xb7   : > { %4366 = vst [vmem:[#allocation96_spill] sm:$0xff] %v2793_v21  ;;  %768 = vrot.lane.b32.xlu2 %v2219_v32, %s2131_s20 }
  0xb8   : > { %734 = vrot.lane.b32.xlu1 %v2796_v4, %s2130_s19 }
  0xb9   : > { %v2802_v37 = vpop.permute.xlu2 %636 }
  0xba   : > { %4368 = vst [vmem:[#allocation98_spill] sm:$0xff] %v2802_v37  ;;  %v2804_v12 = vpop.permute.xlu1 %616 }
  0xbc   : > { %770 = vrot.lane.b32.xlu0 %v2210_v27, %s2131_s20 }
  0xbe   : > { %v2808_v41 = vpop.permute.xlu0 %620 }
  0xbf   : > { %4369 = vst [vmem:[#allocation99_spill] sm:$0xff] %v2808_v41  ;;  %774 = vrot.lane.b32.xlu2 %v2199_v22, %s2131_s20 }
  0xc0   : > { %772 = vrot.lane.b32.xlu1 %v2205_v24, %s2131_s20 }
  0xc1   : > { %v2814_v53 = vpop.permute.xlu2 %676 }
  0xc2   : > { %4370 = vst [vmem:[#allocation100_spill] sm:$0xff] %v2814_v53  ;;  %v2816_v19 = vpop.permute.xlu1 %622 }
  0xc4   : > { %776 = vrot.lane.b32.xlu0 %v2229_v36, %s2131_s20 }
  0xc6   : > { %v2820_v32 = vpop.permute.xlu0 %626 }
  0xc7   : > { %4371 = vst [vmem:[#allocation101_spill] sm:$0xff] %v2820_v32  ;;  %780 = vrot.lane.b32.xlu2 %v2260_v51, %s2131_s20 }
  0xc8   : > { %778 = vrot.lane.b32.xlu1 %v2222_v33, %s2131_s20 }
  0xc9   : > { %v2826_v37 = vpop.permute.xlu2 %682 }
  0xca   : > { %4372 = vst [vmem:[#allocation102_spill] sm:$0xff] %v2826_v37  ;;  %v2828_v27 = vpop.permute.xlu1 %628 }
  0xcb   : > { %4373 = vst [vmem:[#allocation103_spill] sm:$0xff] %v2828_v27  ;;  %v201_v27 = vld [vmem:[%s2184_s17 + $0xf0] sm:$0xff] }
  0xcc   : > { %782 = vrot.lane.b32.xlu0 %v2263_v52, %s2131_s20 }
  0xce   : > { %v2832_v53 = vpop.permute.xlu0 %632 }
  0xcf   : > { %4374 = vst [vmem:[#allocation104_spill] sm:$0xff] %v2832_v53  ;;  %786 = vrot.lane.b32.xlu2 %v2281_v62, %s2131_s20 }
  0xd0   : > { %784 = vrot.lane.b32.xlu1 %v2284_v63, %s2131_s20 }
  0xd1   : > { %v2838_v32 = vpop.permute.xlu2 %688 }
  0xd2   : > { %4375 = vst [vmem:[#allocation105_spill] sm:$0xff] %v2838_v32  ;;  %v2840_v41 = vpop.permute.xlu1 %634 }
  0xd3   : > { %4376 = vst [vmem:[#allocation106_spill] sm:$0xff] %v2840_v41 }
  0xd4   : > { %788 = vrot.lane.b32.xlu0 %v2300_v10, %s2131_s20 }
  0xd6   : > { %v2844_v37 = vpop.permute.xlu0 %638 }
  0xd7   : > { %4377 = vst [vmem:[#allocation107_spill] sm:$0xff] %v2844_v37  ;;  %792 = vrot.lane.b32.xlu2 %v2339_v43, %s2131_s20 }
  0xd8   : > { %790 = vrot.lane.b32.xlu1 %v2297_v9, %s2131_s20 }
  0xd9   : > { %v2850_v53 = vpop.permute.xlu2 %694 }
  0xda   : > { %v2852_v21 = vpop.permute.xlu1 %2100 }
  0xdb   : > { %4378 = vst [vmem:[#allocation108_spill] sm:$0xff] %v2852_v21 }
  0xdc   : > { %794 = vrot.lane.b32.xlu0 %v2332_v35, %s2131_s20 }
  0xde   : > { %v2856_v32 = vpop.permute.xlu0 %678 }
  0xdf   : > { %4379 = vst [vmem:[#allocation109_spill] sm:$0xff] %v2856_v32  ;;  %798 = vrot.lane.b32.xlu2 %v2353_v56, %s2131_s20 }
  0xe0   : > { %796 = vrot.lane.b32.xlu1 %v2356_v57, %s2131_s20 }
  0xe1   : > { %v2862_v37 = vpop.permute.xlu2 %700 }
  0xe2   : > { %v2864_v41 = vpop.permute.xlu1 %680 }
  0xe3   : > { %4380 = vst [vmem:[#allocation110_spill] sm:$0xff] %v2864_v41 }
  0xe4   : > { %800 = vrot.lane.b32.xlu0 %v2372_v7, %s2131_s20 }
  0xe6   : > { %v2868_v59 = vpop.permute.xlu0 %684 }
  0xe7   : > { %4381 = vst [vmem:[#allocation111_spill] sm:$0xff] %v2868_v59  ;;  %804 = vrot.lane.b32.xlu2 %v2410_v61, %s2131_s20 }
  0xe8   : > { %802 = vrot.lane.b32.xlu1 %v2369_v6, %s2131_s20 }
  0xe9   : > { %v2874_v32 = vpop.permute.xlu2 %706 }
  0xea   : > { %v2876_v21 = vpop.permute.xlu1 %686 }
  0xeb   : > { %4382 = vst [vmem:[#allocation112_spill] sm:$0xff] %v2876_v21 }
  0xec   : > { %806 = vrot.lane.b32.xlu0 %v2404_v55, %s2131_s20 }
  0xee   : > { %v2880_v41 = vpop.permute.xlu0 %690 }
  0xef   : > { %4383 = vst [vmem:[#allocation113_spill] sm:$0xff] %v2880_v41  ;;  %810 = vrot.lane.b32.xlu2 %v2424_v31, %s2131_s20 }
  0xf0   : > { %808 = vrot.lane.b32.xlu1 %v2427_v26, %s2131_s20 }
  0xf1   : > { %v2886_v59 = vpop.permute.xlu2 %712 }
  0xf2   : > { %v2888_v6 = vpop.permute.xlu1 %692 }
  0xf4   : > { %812 = vrot.lane.b32.xlu0 %v2450_v18, %s2131_s20  ;;  %v284_v18 = vrot.slane %v201_v27, 7 }
  0xf6   : > { %v2892_v21 = vpop.permute.xlu0 %696 }
  0xf7   : > { %816 = vrot.lane.b32.xlu2 %v2489_v20, %s2131_s20 }
  0xf8   : > { %814 = vrot.lane.b32.xlu1 %v2447_v16, %s2131_s20  ;;  %v2914_v16 = vld [vmem:[%s2184_s17 + $0xf8] sm:$0xff] }
  0xf9   : > { %v2898_v41 = vpop.permute.xlu2 %718 }
  0xfa   : > { %4384 = vst [vmem:[#allocation114_spill] sm:$0xff] %v2898_v41  ;;  %v2900_v7 = vpop.permute.xlu1 %698 }
  0xfb   : > { %4385 = vst [vmem:[#allocation115_spill] sm:$0xff] %v2900_v7 }
  0xfc   : > { %818 = vrot.lane.b32.xlu0 %v2483_v46, %s2131_s20  ;;  %v2921_v46 = vsel %vm236_vm0, 0.0, %v284_v18 }
  0xfd   : > { %4389 = vst [vmem:[#allocation119_spill] sm:$0xff] %v2921_v46 }
  0xfe   : > { %v2904_v26 = vpop.permute.xlu0 %702 }
  0xff   : > { %4386 = vst [vmem:[#allocation116_spill] sm:$0xff] %v2904_v26  ;;  %822 = vrot.lane.b32.xlu2 %v2504_v14, %s2131_s20  ;;  %v4242_v26 = vrot.slane %v2914_v16, 7 }
 0x100   : > { %820 = vrot.lane.b32.xlu1 %v2507_v45, %s2131_s20 }
 0x101   : > { %v2911_v20 = vpop.permute.xlu2 %724  ;;  %v2933_v27 = vsel %vm236_vm0, %v284_v18, %v4242_v26 }
 0x102   : > { %4387 = vst [vmem:[#allocation117_spill] sm:$0xff] %v2911_v20  ;;  %v2916_v41 = vpop.permute.xlu1 %704 }
 0x103   : > { %4388 = vst [vmem:[#allocation118_spill] sm:$0xff] %v2916_v41 }
 0x104   : > { %824 = vrot.lane.b32.xlu0 %v2523_v25, %s2131_s20  ;;  %4391 = vst [vmem:[#allocation121_spill] sm:$0xff] %v2933_v27 }
 0x106   : > { %v2924_v7 = vpop.permute.xlu0 %708 }
 0x107   : > { %4390 = vst [vmem:[#allocation120_spill] sm:$0xff] %v2924_v7  ;;  %828 = vrot.lane.b32.xlu2 %v2921_v46, %s2131_s20 }
 0x108   : > { %826 = vrot.lane.b32.xlu1 %v2520_v8, %s2131_s20 }
 0x109   : > { %v2935_v14 = vpop.permute.xlu2 %730 }
 0x10a   : > { %4392 = vst [vmem:[#allocation122_spill] sm:$0xff] %v2935_v14  ;;  %v2937_v25 = vpop.permute.xlu1 %710 }
 0x10b   : > { %4393 = vst [vmem:[#allocation123_spill] sm:$0xff] %v2937_v25 }
 0x10c   : > { %830 = vrot.lane.b32.xlu0 %v2933_v27, %s2131_s20 }
 0x10e   : > { %v2941_v41 = vpop.permute.xlu0 %714 }
 0x10f   : > { %4394 = vst [vmem:[#allocation124_spill] sm:$0xff] %v2941_v41  ;;  %866 = vrot.lane.b32.xlu2 %v2235_v38, %s2132_s21 }
 0x110   : > { %864 = vrot.lane.b32.xlu1 %v2240_v40, %s2132_s21 }
 0x111   : > { %v2947_v8 = vpop.permute.xlu2 %768 }
 0x112   : > { %4395 = vst [vmem:[#allocation125_spill] sm:$0xff] %v2947_v8  ;;  %v2949_v18 = vpop.permute.xlu1 %716  ;;  %v4404_v8 = vld [vmem:[#allocation18_spill] sm:$0xff] }
 0x113   : > { %4396 = vst [vmem:[#allocation126_spill] sm:$0xff] %v2949_v18 }
 0x114   : > { %868 = vrot.lane.b32.xlu0 %v2256_v49, %s2132_s21 }
 0x116   : > { %v2953_v26 = vpop.permute.xlu0 %720 }
 0x117   : > { %4397 = vst [vmem:[#allocation127_spill] sm:$0xff] %v2953_v26  ;;  %872 = vrot.lane.b32.xlu2 %v2253_v48, %s2132_s21  ;;  %v4401_v26 = vld [vmem:[#allocation17_spill] sm:$0xff] }
 0x118   : > { %870 = vrot.lane.b32.xlu1 %v2225_v34, %s2132_s21 }
 0x119   : > { %v2959_v41 = vpop.permute.xlu2 %774 }
 0x11a   : > { %4398 = vst [vmem:[#allocation128_spill] sm:$0xff] %v2959_v41  ;;  %v2961_v38 = vpop.permute.xlu1 %722 }
 0x11b   : > { %4399 = vst [vmem:[#allocation129_spill] sm:$0xff] %v2961_v38  ;;  %v4406_v38 = vld [vmem:[#allocation19_spill] sm:$0xff] }
 0x11c   : > { %874 = vrot.lane.b32.xlu0 %v2275_v58, %s2132_s21  ;;  %v4407_v58 = vld [vmem:[#allocation20_spill] sm:$0xff] }
 0x11e   : > { %v2965_v40 = vpop.permute.xlu0 %726 }
 0x11f   : > { %4400 = vst [vmem:[#allocation130_spill] sm:$0xff] %v2965_v40  ;;  %878 = vrot.lane.b32.xlu2 %v2289_v5, %s2132_s21 }
 0x120   : > { %876 = vrot.lane.b32.xlu1 %v4401_v26, %s2132_s21  ;;  %v4410_v26 = vld [vmem:[#allocation21_spill] sm:$0xff] }
 0x121   : > { %v2971_v18 = vpop.permute.xlu2 %780 }
 0x122   : > { %4402 = vst [vmem:[#allocation131_spill] sm:$0xff] %v2971_v18  ;;  %v2973_v48 = vpop.permute.xlu1 %728 }
 0x123   : > { %4403 = vst [vmem:[#allocation132_spill] sm:$0xff] %v2973_v48  ;;  %v4412_v48 = vld [vmem:[#allocation22_spill] sm:$0xff] }
 0x124   : > { %880 = vrot.lane.b32.xlu0 %v4404_v8, %s2132_s21  ;;  %v4413_v8 = vld [vmem:[#allocation23_spill] sm:$0xff] }
 0x126   : > { %v2977_v41 = vpop.permute.xlu0 %732 }
 0x127   : > { %4405 = vst [vmem:[#allocation133_spill] sm:$0xff] %v2977_v41  ;;  %884 = vrot.lane.b32.xlu2 %v4406_v38, %s2132_s21 }
 0x128   : > { %882 = vrot.lane.b32.xlu1 %v4407_v58, %s2132_s21  ;;  %v4415_v58 = vld [vmem:[#allocation26_spill] sm:$0xff] }
 0x129   : > { %v2983_v40 = vpop.permute.xlu2 %786 }
 0x12a   : > { %4408 = vst [vmem:[#allocation19_spill] sm:$0xff] %v2983_v40  ;;  %v2985_v5 = vpop.permute.xlu1 %734 }
 0x12b   : > { %4409 = vst [vmem:[#allocation134_spill] sm:$0xff] %v2985_v5  ;;  %v4417_v5 = vld [vmem:[#allocation27_spill] sm:$0xff] }
 0x12c   : > { %886 = vrot.lane.b32.xlu0 %v4410_v26, %s2132_s21 }
 0x12e   : > { %v2989_v18 = vpop.permute.xlu0 %770 }
 0x12f   : > { %4411 = vst [vmem:[#allocation135_spill] sm:$0xff] %v2989_v18  ;;  %890 = vrot.lane.b32.xlu2 %v4412_v48, %s2132_s21  ;;  %v4418_v18 = vld [vmem:[#allocation28_spill] sm:$0xff] }
 0x130   : > { %888 = vrot.lane.b32.xlu1 %v4413_v8, %s2132_s21  ;;  %v4421_v8 = vld [vmem:[#allocation29_spill] sm:$0xff] }
 0x131   : > { %v2995_v41 = vpop.permute.xlu2 %792 }
 0x132   : > { %v2997_v25 = vpop.permute.xlu1 %772 }
 0x133   : > { %4414 = vst [vmem:[#allocation136_spill] sm:$0xff] %v2997_v25  ;;  %v4423_v25 = vld [vmem:[#allocation31_spill] sm:$0xff] }
 0x134   : > { %892 = vrot.lane.b32.xlu0 %v4415_v58, %s2132_s21  ;;  %v4424_v58 = vld [vmem:[#allocation32_spill] sm:$0xff] }
 0x136   : > { %v3001_v40 = vpop.permute.xlu0 %776 }
 0x137   : > { %4416 = vst [vmem:[#allocation137_spill] sm:$0xff] %v3001_v40  ;;  %896 = vrot.lane.b32.xlu2 %v4417_v5, %s2132_s21 }
 0x138   : > { %894 = vrot.lane.b32.xlu1 %v4418_v18, %s2132_s21  ;;  %v4427_v18 = vld [vmem:[#allocation35_spill] sm:$0xff] }
 0x139   : > { %v3007_v26 = vpop.permute.xlu2 %798 }
 0x13a   : > { %4419 = vst [vmem:[#allocation138_spill] sm:$0xff] %v3007_v26  ;;  %v3009_v48 = vpop.permute.xlu1 %778  ;;  %v4437_v26 = vrot.slane %v2914_v16, 7  ;;  %v4439_v16 = vld [vmem:[#allocation50_spill] sm:$0xff] }
 0x13b   : > { %4420 = vst [vmem:[#allocation139_spill] sm:$0xff] %v3009_v48  ;;  %v4428_v48 = vld [vmem:[#allocation37_spill] sm:$0xff] }
 0x13c   : > { %898 = vrot.lane.b32.xlu0 %v4421_v8, %s2132_s21  ;;  %v4429_v8 = vld [vmem:[#allocation38_spill] sm:$0xff] }
 0x13e   : > { %v3013_v34 = vpop.permute.xlu0 %782 }
 0x13f   : > { %4422 = vst [vmem:[#allocation140_spill] sm:$0xff] %v3013_v34  ;;  %902 = vrot.lane.b32.xlu2 %v4423_v25, %s2132_s21  ;;  %v566_v25 = vrot.slane %v2921_v46, 1 }
 0x140   : > { %900 = vrot.lane.b32.xlu1 %v4424_v58, %s2132_s21 }
 0x141   : > { %v3019_v40 = vpop.permute.xlu2 %804 }
 0x142   : > { %4425 = vst [vmem:[#allocation32_spill] sm:$0xff] %v3019_v40  ;;  %v3021_v5 = vpop.permute.xlu1 %784 }
 0x143   : > { %4426 = vst [vmem:[#allocation141_spill] sm:$0xff] %v3021_v5  ;;  %v4432_v5 = vld [vmem:[#allocation43_spill] sm:$0xff] }
 0x144   : > { %904 = vrot.lane.b32.xlu0 %v4427_v18, %s2132_s21  ;;  %v4433_v18 = vld [vmem:[#allocation44_spill] sm:$0xff] }
 0x146   : > { %v3025_v14 = vpop.permute.xlu0 %788 }
 0x147   : > { %908 = vrot.lane.b32.xlu2 %v4428_v48, %s2132_s21 }
 0x148   : > { %906 = vrot.lane.b32.xlu1 %v4429_v8, %s2132_s21  ;;  %v4435_v8 = vld [vmem:[#allocation47_spill] sm:$0xff] }
 0x149   : > { %v3031_v34 = vpop.permute.xlu2 %810 }
 0x14a   : > { %4430 = vst [vmem:[#allocation142_spill] sm:$0xff] %v3031_v34  ;;  %v3033_v7 = vpop.permute.xlu1 %790 }
 0x14c   : > { %910 = vrot.lane.b32.xlu0 %v2498_v54, %s2132_s21  ;;  %v3054_v54 = vsel %vm236_vm0, %v4437_v26, 0.0 }
 0x14e   : > { %v3037_v40 = vpop.permute.xlu0 %794 }
 0x14f   : > { %4431 = vst [vmem:[#allocation143_spill] sm:$0xff] %v3037_v40  ;;  %914 = vrot.lane.b32.xlu2 %v4432_v5, %s2132_s21  ;;  %v567_v5 = vrot.slane %v2933_v27, 1 }
 0x150   : > { %912 = vrot.lane.b32.xlu1 %v4433_v18, %s2132_s21  ;;  %v569_v18 = vrot.slane %v3054_v54, 1 }
 0x151   : > { %v3043_v20 = vpop.permute.xlu2 %816 }
 0x152   : > { %4434 = vst [vmem:[#allocation144_spill] sm:$0xff] %v3043_v20  ;;  %v3045_v48 = vpop.permute.xlu1 %796  ;;  %v3070_v26 = vsel %vm402_vm1, %v567_v5, %v569_v18 }
 0x153   : > { %4440 = vst [vmem:[#allocation146_spill] sm:$0xff] %v3070_v26 }
 0x154   : > { %916 = vrot.lane.b32.xlu0 %v4435_v8, %s2132_s21 }
 0x156   : > { %v3049_v34 = vpop.permute.xlu0 %800 }
 0x157   : > { %4436 = vst [vmem:[#allocation47_spill] sm:$0xff] %v3049_v34  ;;  %920 = vrot.lane.b32.xlu2 %v2544_v30, %s2132_s21 }
 0x158   : > { %918 = vrot.lane.b32.xlu1 %v2548_v17, %s2132_s21  ;;  %v3075_v17 = vsel %vm402_vm1, %v566_v25, %v567_v5  ;;  %v4446_v5 = vld [vmem:[#allocation52_spill] sm:$0xff] }
 0x159   : > { %v3062_v20 = vpop.permute.xlu2 %822  ;;  %4442 = vst [vmem:[#allocation148_spill] sm:$0xff] %v3075_v17 }
 0x15a   : > { %4438 = vst [vmem:[#allocation145_spill] sm:$0xff] %v3062_v20  ;;  %v3065_v34 = vpop.permute.xlu1 %802 }
 0x15c   : > { %922 = vrot.lane.b32.xlu0 %v4439_v16, %s2132_s21  ;;  %v4444_v16 = vld [vmem:[#allocation51_spill] sm:$0xff] }
 0x15e   : > { %v3072_v30 = vpop.permute.xlu0 %806 }
 0x15f   : > { %4441 = vst [vmem:[#allocation147_spill] sm:$0xff] %v3072_v30  ;;  %926 = vrot.lane.b32.xlu2 %v3070_v26, %s2132_s21  ;;  %v4464_v30 = vld [vmem:[#allocation70_spill] sm:$0xff] }
 0x160   : > { %924 = vrot.lane.b32.xlu1 %v3075_v17, %s2132_s21  ;;  %v4448_v17 = vld [vmem:[#allocation53_spill] sm:$0xff] }
 0x161   : > { %v3081_v20 = vpop.permute.xlu2 %828 }
 0x162   : > { %4443 = vst [vmem:[#allocation149_spill] sm:$0xff] %v3081_v20  ;;  %v3083_v40 = vpop.permute.xlu1 %808 }
 0x164   : > { %960 = vrot.lane.b32.xlu0 %v4444_v16, %s2133_s22 }
 0x166   : > { %v3087_v18 = vpop.permute.xlu0 %812 }
 0x167   : > { %4445 = vst [vmem:[#allocation51_spill] sm:$0xff] %v3087_v18  ;;  %964 = vrot.lane.b32.xlu2 %v2583_v1, %s2133_s22 }
 0x168   : > { %962 = vrot.lane.b32.xlu1 %v4446_v5, %s2133_s22  ;;  %v4451_v5 = vld [vmem:[#allocation56_spill] sm:$0xff] }
 0x169   : > { %v3093_v25 = vpop.permute.xlu2 %866 }
 0x16a   : > { %4447 = vst [vmem:[#allocation52_spill] sm:$0xff] %v3093_v25  ;;  %v3095_v26 = vpop.permute.xlu1 %814 }
 0x16c   : > { %966 = vrot.lane.b32.xlu0 %v4448_v17, %s2133_s22 }
 0x16e   : > { %v3099_v20 = vpop.permute.xlu0 %818 }
 0x16f   : > { %4449 = vst [vmem:[#allocation150_spill] sm:$0xff] %v3099_v20  ;;  %970 = vrot.lane.b32.xlu2 %v2604_v28, %s2133_s22  ;;  %v4453_v20 = vld [vmem:[#allocation58_spill] sm:$0xff] }
 0x170   : > { %968 = vrot.lane.b32.xlu1 %v2590_v23, %s2133_s22  ;;  %v4456_v23 = vld [vmem:[#allocation60_spill] sm:$0xff] }
 0x171   : > { %v3105_v16 = vpop.permute.xlu2 %872 }
 0x172   : > { %4450 = vst [vmem:[#allocation151_spill] sm:$0xff] %v3105_v16  ;;  %v3107_v18 = vpop.permute.xlu1 %820 }
 0x174   : > { %972 = vrot.lane.b32.xlu0 %v4451_v5, %s2133_s22  ;;  %v4458_v5 = vld [vmem:[#allocation62_spill] sm:$0xff] }
 0x176   : > { %v3111_v25 = vpop.permute.xlu0 %824 }
 0x177   : > { %4452 = vst [vmem:[#allocation152_spill] sm:$0xff] %v3111_v25  ;;  %976 = vrot.lane.b32.xlu2 %v2626_v50, %s2133_s22 }
 0x178   : > { %974 = vrot.lane.b32.xlu1 %v4453_v20, %s2133_s22  ;;  %v4460_v20 = vld [vmem:[#allocation64_spill] sm:$0xff] }
 0x179   : > { %v3117_v17 = vpop.permute.xlu2 %878 }
 0x17a   : > { %4454 = vst [vmem:[#allocation153_spill] sm:$0xff] %v3117_v17  ;;  %v3119_v28 = vpop.permute.xlu1 %826 }
 0x17b   : > { %4455 = vst [vmem:[#allocation154_spill] sm:$0xff] %v3119_v28 }
 0x17c   : > { %978 = vrot.lane.b32.xlu0 %v4456_v23, %s2133_s22  ;;  %v4462_v23 = vld [vmem:[#allocation67_spill] sm:$0xff] }
 0x17e   : > { %v3123_v16 = vpop.permute.xlu0 %830 }
 0x17f   : > { %4457 = vst [vmem:[#allocation155_spill] sm:$0xff] %v3123_v16  ;;  %982 = vrot.lane.b32.xlu2 %v2649_v15, %s2133_s22 }
 0x180   : > { %980 = vrot.lane.b32.xlu1 %v4458_v5, %s2133_s22 }
 0x181   : > { %v3129_v25 = vpop.permute.xlu2 %884 }
 0x182   : > { %v3131_v50 = vpop.permute.xlu1 %864 }
 0x183   : > { %4459 = vst [vmem:[#allocation62_spill] sm:$0xff] %v3131_v50  ;;  %v574_v50 = vrot.slane %v3054_v54, 2 }
 0x184   : > { %984 = vrot.lane.b32.xlu0 %v4460_v20, %s2133_s22 }
 0x186   : > { %v3135_v17 = vpop.permute.xlu0 %868 }
 0x187   : > { %4461 = vst [vmem:[#allocation156_spill] sm:$0xff] %v3135_v17  ;;  %988 = vrot.lane.b32.xlu2 %v2675_v13, %s2133_s22 }
 0x188   : > { %986 = vrot.lane.b32.xlu1 %v4462_v23, %s2133_s22  ;;  %v4467_v23 = vld [vmem:[#allocation76_spill] sm:$0xff] }
 0x189   : > { %v3141_v16 = vpop.permute.xlu2 %890 }
 0x18a   : > { %v3143_v15 = vpop.permute.xlu1 %870 }
 0x18b   : > { %4463 = vst [vmem:[#allocation157_spill] sm:$0xff] %v3143_v15 }
 0x18c   : > { %990 = vrot.lane.b32.xlu0 %v4464_v30, %s2133_s22  ;;  %v4469_v30 = vld [vmem:[#allocation79_spill] sm:$0xff] }
 0x18e   : > { %v3147_v28 = vpop.permute.xlu0 %874 }
 0x18f   : > { %4465 = vst [vmem:[#allocation158_spill] sm:$0xff] %v3147_v28  ;;  %994 = vrot.lane.b32.xlu2 %v2700_v60, %s2133_s22 }
 0x190   : > { %992 = vrot.lane.b32.xlu1 %v2682_v39, %s2133_s22  ;;  %v4472_v39 = vld [vmem:[#allocation82_spill] sm:$0xff] }
 0x191   : > { %v3153_v17 = vpop.permute.xlu2 %896 }
 0x192   : > { %v3155_v13 = vpop.permute.xlu1 %876 }
 0x193   : > { %4466 = vst [vmem:[#allocation159_spill] sm:$0xff] %v3155_v13 }
 0x194   : > { %996 = vrot.lane.b32.xlu0 %v4467_v23, %s2133_s22 }
 0x196   : > { %v3159_v20 = vpop.permute.xlu0 %880 }
 0x197   : > { %4468 = vst [vmem:[#allocation76_spill] sm:$0xff] %v3159_v20  ;;  %1000 = vrot.lane.b32.xlu2 %v2726_v47, %s2133_s22 }
 0x198   : > { %998 = vrot.lane.b32.xlu1 %v4469_v30, %s2133_s22 }
 0x199   : > { %v3165_v28 = vpop.permute.xlu2 %902 }
 0x19a   : > { %4470 = vst [vmem:[#allocation79_spill] sm:$0xff] %v3165_v28  ;;  %v3167_v60 = vpop.permute.xlu1 %882 }
 0x19b   : > { %4471 = vst [vmem:[#allocation160_spill] sm:$0xff] %v3167_v60 }
 0x19c   : > { %1002 = vrot.lane.b32.xlu0 %v4472_v39, %s2133_s22  ;;  %v4474_v39 = vld [vmem:[#allocation91_spill] sm:$0xff] }
 0x19e   : > { %v887_v15 = vpop.permute.xlu0 %886 }
 0x19f   : > { %1006 = vrot.lane.b32.xlu2 %v2751_v42, %s2133_s22 }
 0x1a0   : > { %1004 = vrot.lane.b32.xlu1 %v2733_v3, %s2133_s22  ;;  %v571_v3 = vrot.slane %v2921_v46, 2 }
 0x1a1   : > { %v3175_v20 = vpop.permute.xlu2 %908 }
 0x1a2   : > { %4473 = vst [vmem:[#allocation161_spill] sm:$0xff] %v3175_v20  ;;  %v3177_v13 = vpop.permute.xlu1 %888  ;;  %v572_v20 = vrot.slane %v2933_v27, 2 }
 0x1a4   : > { %1008 = vrot.lane.b32.xlu0 %v2745_v44, %s2133_s22  ;;  %v3214_v46 = vsel %vm483_vm2, %v572_v20, %v574_v50 }
 0x1a5   : > { %4478 = vst [vmem:[#allocation165_spill] sm:$0xff] %v3214_v46 }
 0x1a6   : > { %v3181_v47 = vpop.permute.xlu0 %892 }
 0x1a7   : > { %1012 = vrot.lane.b32.xlu2 %v2777_v29, %s2133_s22 }
 0x1a8   : > { %1010 = vrot.lane.b32.xlu1 %v4474_v39, %s2133_s22  ;;  %v3202_v39 = vsel %vm483_vm2, %v571_v3, %v572_v20 }
 0x1a9   : > { %v3187_v60 = vpop.permute.xlu2 %914  ;;  %4476 = vst [vmem:[#allocation163_spill] sm:$0xff] %v3202_v39 }
 0x1aa   : > { %4475 = vst [vmem:[#allocation162_spill] sm:$0xff] %v3187_v60  ;;  %v3189_v42 = vpop.permute.xlu1 %894 }
 0x1ac   : > { %1014 = vrot.lane.b32.xlu0 %v2770_v11, %s2133_s22 }
 0x1ae   : > { %v3195_v44 = vpop.permute.xlu0 %898 }
 0x1af   : > { %1018 = vrot.lane.b32.xlu2 %v2796_v4, %s2133_s22 }
 0x1b0   : > { %1016 = vrot.lane.b32.xlu1 %v2784_v0, %s2133_s22 }
 0x1b1   : > { %v3204_v60 = vpop.permute.xlu2 %920 }
 0x1b2   : > { %4477 = vst [vmem:[#allocation164_spill] sm:$0xff] %v3204_v60  ;;  %v3207_v28 = vpop.permute.xlu1 %900 }
 0x1b4   : > { %1020 = vrot.lane.b32.xlu0 %v3202_v39, %s2133_s22 }
 0x1b6   : > { %v3211_v27 = vpop.permute.xlu0 %904 }
 0x1b7   : > { %1056 = vrot.lane.b32.xlu2 %v2205_v24, %s2134_s23  ;;  %v4484_v24 = vld [vmem:[#allocation87_spill] sm:$0xff] }
 0x1b8   : > { %1022 = vrot.lane.b32.xlu1 %v3214_v46, %s2133_s22 }
 0x1b9   : > { %v3220_v3 = vpop.permute.xlu2 %926 }
 0x1ba   : > { %4479 = vst [vmem:[#allocation166_spill] sm:$0xff] %v3220_v3  ;;  %v3222_v54 = vpop.permute.xlu1 %906  ;;  %v1356_v3 = vsel %vm1344_vm3, %v2281_v62, %v4484_v24 }
 0x1bc   : > { %1058 = vrot.lane.b32.xlu0 %v2199_v22, %s2134_s23 }
 0x1be   : > { %v3226_v39 = vpop.permute.xlu0 %910 }
 0x1bf   : > { %1062 = vrot.lane.b32.xlu2 %v2222_v33, %s2134_s23 }
 0x1c0   : > { %1060 = vrot.lane.b32.xlu1 %v2229_v36, %s2134_s23 }
 0x1c1   : > { %v3232_v20 = vpop.permute.xlu2 %964 }
 0x1c2   : > { %4480 = vst [vmem:[#allocation167_spill] sm:$0xff] %v3232_v20  ;;  %v3234_v50 = vpop.permute.xlu1 %912 }
 0x1c4   : > { %1064 = vrot.lane.b32.xlu0 %v2260_v51, %s2134_s23 }
 0x1c6   : > { %v3238_v46 = vpop.permute.xlu0 %916 }
 0x1c7   : > { %1068 = vrot.lane.b32.xlu2 %v2284_v63, %s2134_s23 }
 0x1c8   : > { %1066 = vrot.lane.b32.xlu1 %v2263_v52, %s2134_s23  ;;  %v1389_v52 = vsel %vm1377_vm4, %v1356_v3, %v2850_v53  ;;  %v4485_v3 = vld [vmem:[#allocation93_spill] sm:$0xff] }
 0x1c9   : > { %v3244_v4 = vpop.permute.xlu2 %970 }
 0x1ca   : > { %4481 = vst [vmem:[#allocation168_spill] sm:$0xff] %v3244_v4  ;;  %v3246_v33 = vpop.permute.xlu1 %918 }
 0x1cc   : > { %1070 = vrot.lane.b32.xlu0 %v2281_v62, %s2134_s23 }
 0x1ce   : > { %v3250_v22 = vpop.permute.xlu0 %922 }
 0x1cf   : > { %1074 = vrot.lane.b32.xlu2 %v2297_v9, %s2134_s23 }
 0x1d0   : > { %1072 = vrot.lane.b32.xlu1 %v2300_v10, %s2134_s23 }
 0x1d1   : > { %v3256_v51 = vpop.permute.xlu2 %976 }
 0x1d2   : > { %4482 = vst [vmem:[#allocation169_spill] sm:$0xff] %v3256_v51  ;;  %v3258_v20 = vpop.permute.xlu1 %924  ;;  %v1422_v51 = vsel %vm1410_vm5, %v1389_v52, %v3033_v7  ;;  %v1359_v52 = vsel %vm1344_vm3, %v2339_v43, %v4485_v3 }
 0x1d3   : > { %4483 = vst [vmem:[#allocation170_spill] sm:$0xff] %v3258_v20  ;;  %v1455_v20 = vsel %vm1443_vm6, %v1422_v51, %v887_v15  ;;  %v1392_v7 = vsel %vm1377_vm4, %v1359_v52, %v2862_v37 }
 0x1d4   : > { %1076 = vrot.lane.b32.xlu0 %v2339_v43, %s2134_s23  ;;  %v1425_v51 = vsel %vm1410_vm5, %v1392_v7, %v3045_v48  ;;  %v1362_v48 = vsel %vm1344_vm3, %v2353_v56, %v2789_v2 }
 0x1d5   : > { %v1458_v15 = vsel %vm1443_vm6, %v1425_v51, %v3181_v47 }
 0x1d6   : > { %v3262_v4 = vpop.permute.xlu0 %960 }
 0x1d7   : > { %1080 = vrot.lane.b32.xlu2 %v2356_v57, %s2134_s23 }
 0x1d8   : > { %1078 = vrot.lane.b32.xlu1 %v2332_v35, %s2134_s23 }
 0x1d9   : > { %v983_v60 = vpop.permute.xlu2 %982 }
 0x1da   : > { %v3277_v24 = vsel %vm1476_vm7, %v1455_v20, %v983_v60  ;;  %v3279_v62 = vpop.permute.xlu1 %962 }
 0x1dc   : > { %1082 = vrot.lane.b32.xlu0 %v2353_v56, %s2134_s23 }
 0x1de   : > { %v3283_v53 = vpop.permute.xlu0 %966 }
 0x1df   : > { %1184 = vrot.lane.b32.xlu2 %v4424_v58, %s2135_s24  ;;  %v1395_v58 = vsel %vm1377_vm4, %v1362_v48, %v2874_v32 }
 0x1e0   : > { %1088 = vrot.lane.b32.xlu1 %v2410_v61, %s2134_s23  ;;  %v1428_v47 = vsel %vm1410_vm5, %v1395_v58, %v3065_v34  ;;  %v1365_v34 = vsel %vm1344_vm3, %v2410_v61, %v2804_v12  ;;  %v4489_v58 = vld [vmem:[#allocation114_spill] sm:$0xff] }
 0x1e1   : > { %v989_v60 = vpop.permute.xlu2 %988  ;;  %v1461_v3 = vsel %vm1443_vm6, %v1428_v47, %v3195_v44  ;;  %v1398_v44 = vsel %vm1377_vm4, %v1365_v34, %v2886_v59  ;;  %v4487_v59 = vld [vmem:[#allocation68_spill] sm:$0xff] }
 0x1e2   : > { %v3299_v20 = vsel %vm1476_vm7, %v1458_v15, %v989_v60  ;;  %v3301_v43 = vpop.permute.xlu1 %968  ;;  %v1368_v15 = vsel %vm1344_vm3, %v2424_v31, %v2816_v19  ;;  %v4491_v19 = vld [vmem:[#allocation143_spill] sm:$0xff] }
 0x1e3   : > { %v1401_v47 = vsel %vm1377_vm4, %v1368_v15, %v4489_v58 }
 0x1e4   : > { %1104 = vrot.lane.b32.xlu0 %v2507_v45, %s2134_s23 }
 0x1e6   : > { %v3305_v37 = vpop.permute.xlu0 %972 }
 0x1e7   : > { %1200 = vrot.lane.b32.xlu2 %v4435_v8, %s2135_s24  ;;  %v4486_v8 = vld [vmem:[#allocation83_spill] sm:$0xff] }
 0x1e8   : > { %1280 = vrot.lane.b32.xlu1 %v4467_v23, %s2136_s25  ;;  %v1355_v23 = vsel %vm1344_vm3, %v2284_v63, %v4486_v8  ;;  %v4492_v8 = vld [vmem:[#allocation74_spill] sm:$0xff] }
 0x1e9   : > { %v995_v52 = vpop.permute.xlu2 %994  ;;  %v1388_v2 = vsel %vm1377_vm4, %v1355_v23, %v2888_v6 }
 0x1ea   : > { %v3321_v7 = vsel %vm1476_vm7, %v1461_v3, %v995_v52  ;;  %v3323_v56 = vpop.permute.xlu1 %974  ;;  %v1421_v61 = vsel %vm1410_vm5, %v1388_v2, %v3025_v14  ;;  %v1434_v3 = vsel %vm1410_vm5, %v1401_v47, %v3095_v26  ;;  %v4493_v2 = vld [vmem:[#allocation116_spill] sm:$0xff] }
 0x1eb   : > { %v1454_v6 = vsel %vm1443_vm6, %v1421_v61, %v3129_v25  ;;  %v4495_v61 = vld [vmem:[#allocation138_spill] sm:$0xff] }
 0x1ec   : > { %1296 = vrot.lane.b32.xlu0 %v2777_v29, %s2136_s25  ;;  %v1431_v29 = vsel %vm1410_vm5, %v1398_v44, %v3083_v40 }
 0x1ed   : > { %v1464_v63 = vsel %vm1443_vm6, %v1431_v29, %v3211_v27 }
 0x1ee   : > { %v3327_v32 = vpop.permute.xlu0 %978 }
 0x1ef   : > { %1168 = vrot.lane.b32.xlu2 %v4406_v38, %s2135_s24  ;;  %v1357_v38 = vsel %vm1344_vm3, %v2300_v10, %v4487_v59  ;;  %v4497_v59 = vld [vmem:[#allocation40_spill] sm:$0xff] }
 0x1f0   : > { %1152 = vrot.lane.b32.xlu1 %v2256_v49, %s2135_s24  ;;  %v1390_v49 = vsel %vm1377_vm4, %v1357_v38, %v2892_v21  ;;  %v4488_v21 = vld [vmem:[#allocation89_spill] sm:$0xff] }
 0x1f1   : > { %v1001_v12 = vpop.permute.xlu2 %1000  ;;  %v1423_v27 = vsel %vm1410_vm5, %v1390_v49, %v2995_v41  ;;  %v1358_v48 = vsel %vm1344_vm3, %v2297_v9, %v4488_v21  ;;  %v4490_v41 = vld [vmem:[#allocation115_spill] sm:$0xff]  ;;  %v1467_v9 = vsel %vm1443_vm6, %v1434_v3, %v3226_v39  ;;  %v4501_v21 = vld [vmem:[#allocation42_spill] sm:$0xff] }
 0x1f2   : > { %v3355_v51 = vsel %vm1476_vm7, %v1464_v63, %v1001_v12  ;;  %v981_v40 = vpop.permute.xlu1 %980  ;;  %v1456_v10 = vsel %vm1443_vm6, %v1423_v27, %v3177_v13  ;;  %v1391_v13 = vsel %vm1377_vm4, %v1358_v48, %v4490_v41  ;;  %v4494_v39 = vld [vmem:[#allocation31_spill] sm:$0xff]  ;;  %v4499_v27 = vld [vmem:[#allocation117_spill] sm:$0xff]  ;;  %v4503_v41 = vld [vmem:[#allocation80_spill] sm:$0xff] }
 0x1f3   : > { %v3360_v14 = vsel %vm1476_vm7, %v1454_v6, %v981_v40  ;;  %v1424_v52 = vsel %vm1410_vm5, %v1391_v13, %v4491_v19  ;;  %v4496_v12 = vld [vmem:[#allocation103_spill] sm:$0xff]  ;;  %v4498_v40 = vld [vmem:[#allocation94_spill] sm:$0xff]  ;;  %v4504_v13 = vld [vmem:[#allocation25_spill] sm:$0xff] }
 0x1f4   : > { %1090 = vrot.lane.b32.xlu0 %v2404_v55, %s2134_s23  ;;  %v1457_v23 = vsel %vm1443_vm6, %v1424_v52, %v3141_v16  ;;  %v1371_v38 = vsel %vm1344_vm3, %v4497_v59, %v4496_v12  ;;  %v1361_v49 = vsel %vm1344_vm3, %v2356_v57, %v4498_v40  ;;  %v4502_v48 = vld [vmem:[#allocation47_spill] sm:$0xff]  ;;  %v4505_v52 = vld [vmem:[#allocation120_spill] sm:$0xff]  ;;  %v4514_v40 = vld [vmem:[#allocation154_spill] sm:$0xff] }
 0x1f5   : > { %v4512_v12 = vld [vmem:[#allocation11_spill] sm:$0xff] }
 0x1f6   : > { %v985_v25 = vpop.permute.xlu0 %984 }
 0x1f7   : > { %v3372_v60 = vsel %vm1476_vm7, %v1456_v10, %v985_v25  ;;  %1264 = vrot.lane.b32.xlu2 %v4458_v5, %s2136_s25  ;;  %v1360_v5 = vsel %vm1344_vm3, %v2332_v35, %v4492_v8  ;;  %v1404_v10 = vsel %vm1377_vm4, %v1371_v38, %v4499_v27  ;;  %v4500_v25 = vld [vmem:[#allocation118_spill] sm:$0xff]  ;;  %v4507_v8 = vld [vmem:[#allocation32_spill] sm:$0xff]  ;;  %v4513_v38 = vld [vmem:[#allocation123_spill] sm:$0xff] }
 0x1f8   : > { %1248 = vrot.lane.b32.xlu1 %v2583_v1, %s2136_s25  ;;  %v1393_v1 = vsel %vm1377_vm4, %v1360_v5, %v4493_v2  ;;  %v1437_v15 = vsel %vm1410_vm5, %v1404_v10, %v3107_v18  ;;  %v4515_v27 = vld [vmem:[#allocation65_spill] sm:$0xff] }
 0x1f9   : > { %v1007_v34 = vpop.permute.xlu2 %1006  ;;  %v1426_v63 = vsel %vm1410_vm5, %v1393_v1, %v4495_v61  ;;  %v1470_v57 = vsel %vm1443_vm6, %v1437_v15, %v3238_v46  ;;  %v4506_v46 = vld [vmem:[#allocation49_spill] sm:$0xff]  ;;  %v4510_v61 = vld [vmem:[#allocation24_spill] sm:$0xff]  ;;  %v2097_v10 = vunpack.i.l.bf16 %v4515_v27 }
 0x1fa   : > { %v3397_v44 = vsel %vm1476_vm7, %v1467_v9, %v1007_v34  ;;  %v987_v26 = vpop.permute.xlu1 %986  ;;  %v1459_v35 = vsel %vm1443_vm6, %v1426_v63, %v3189_v42  ;;  %v1394_v42 = vsel %vm1377_vm4, %v1361_v49, %v4500_v25  ;;  %v4516_v25 = vld [vmem:[#allocation147_spill] sm:$0xff] }
 0x1fb   : > { %v3402_v29 = vsel %vm1476_vm7, %v1457_v23, %v987_v26  ;;  %v1427_v58 = vsel %vm1410_vm5, %v1394_v42, %v4502_v48  ;;  %v4508_v26 = vld [vmem:[#allocation106_spill] sm:$0xff] }
 0x1fc   : > { %1186 = vrot.lane.b32.xlu0 %v4494_v39, %s2135_s24  ;;  %v1460_v3 = vsel %vm1443_vm6, %v1427_v58, %v3153_v17  ;;  %v1374_v2 = vsel %vm1344_vm3, %v4501_v21, %v4508_v26  ;;  %v4509_v39 = vld [vmem:[#allocation96_spill] sm:$0xff]  ;;  %v4517_v48 = vld [vmem:[#allocation86_spill] sm:$0xff] }
 0x1fd   : > { %v1364_v63 = vsel %vm1344_vm3, %v4510_v61, %v4509_v39  ;;  %v1366_v58 = vsel %vm1344_vm3, %v2404_v55, %v4517_v48  ;;  %v4524_v39 = vld [vmem:[#allocation99_spill] sm:$0xff]  ;;  %v4532_v48 = vld [vmem:[#allocation34_spill] sm:$0xff] }
 0x1fe   : > { %v991_v16 = vpop.permute.xlu0 %990 }
 0x1ff   : > { %v3414_v6 = vsel %vm1476_vm7, %v1459_v35, %v991_v16  ;;  %1282 = vrot.lane.b32.xlu2 %v4469_v30, %s2136_s25  ;;  %v1363_v30 = vsel %vm1344_vm3, %v4504_v13, %v4503_v41  ;;  %v4511_v35 = vld [vmem:[#allocation122_spill] sm:$0xff]  ;;  %v4519_v41 = vld [vmem:[#allocation79_spill] sm:$0xff] }
 0x200   : > { %1106 = vrot.lane.b32.xlu1 %v4501_v21, %s2134_s23  ;;  %v1396_v9 = vsel %vm1377_vm4, %v1363_v30, %v4505_v52  ;;  %v1407_v16 = vsel %vm1377_vm4, %v1374_v2, %v4511_v35 }
 0x201   : > { %v1013_v47 = vpop.permute.xlu2 %1012  ;;  %v1429_v5 = vsel %vm1410_vm5, %v1396_v9, %v4507_v8  ;;  %v1440_v49 = vsel %vm1410_vm5, %v1407_v16, %v4514_v40  ;;  %v4523_v8 = vld [vmem:[#allocation4_spill] sm:$0xff]  ;;  %v4526_v16 = vld [vmem:[#allocation125_spill] sm:$0xff]  ;;  %v4529_v40 = vld [vmem:[#allocation62_spill] sm:$0xff] }
 0x202   : > { %v3439_v19 = vsel %vm1476_vm7, %v1470_v57, %v1013_v47  ;;  %v993_v18 = vpop.permute.xlu1 %992  ;;  %v1462_v23 = vsel %vm1443_vm6, %v1429_v5, %v3207_v28  ;;  %v1397_v28 = vsel %vm1377_vm4, %v1364_v63, %v4513_v38  ;;  %v1473_v15 = vsel %vm1443_vm6, %v1440_v49, %v3250_v22  ;;  %v4518_v57 = vld [vmem:[#allocation108_spill] sm:$0xff]  ;;  %v4521_v22 = vld [vmem:[#allocation21_spill] sm:$0xff]  ;;  %v4525_v63 = vld [vmem:[#allocation30_spill] sm:$0xff] }
 0x203   : > { %v3444_v34 = vsel %vm1476_vm7, %v1460_v3, %v993_v18  ;;  %v1430_v42 = vsel %vm1410_vm5, %v1397_v28, %v4516_v25  ;;  %v2102_v47 = vunpack.i.l.bf16 %v4518_v57  ;;  %v4520_v18 = vld [vmem:[#allocation124_spill] sm:$0xff]  ;;  %v1345_v5 = vsel %vm1344_vm3, %v4523_v8, %v2097_v10  ;;  %v4527_v38 = vld [vmem:[#allocation53_spill] sm:$0xff]  ;;  %v4528_v28 = vld [vmem:[#allocation126_spill] sm:$0xff] }
 0x204   : > { %1202 = vrot.lane.b32.xlu0 %v4506_v46, %s2135_s24  ;;  %v1463_v30 = vsel %vm1443_vm6, %v1430_v42, %v4519_v41  ;;  %v1399_v52 = vsel %vm1377_vm4, %v1366_v58, %v4520_v18  ;;  %v4522_v46 = vld [vmem:[#allocation142_spill] sm:$0xff]  ;;  %v1367_v35 = vsel %vm1344_vm3, %v4525_v63, %v4524_v39  ;;  %v4530_v10 = vld [vmem:[#allocation51_spill] sm:$0xff] }
 0x205   : > { %v1432_v55 = vsel %vm1410_vm5, %v1399_v52, %v4522_v46  ;;  %v1378_v26 = vsel %vm1377_vm4, %v1345_v5, %v2102_v47  ;;  %v4533_v47 = vld [vmem:[#allocation161_spill] sm:$0xff]  ;;  %v4534_v18 = vld [vmem:[#allocation127_spill] sm:$0xff]  ;;  %v4536_v46 = vld [vmem:[#allocation144_spill] sm:$0xff] }
 0x206   : > { %v997_v17 = vpop.permute.xlu0 %996  ;;  %v4537_v5 = vld [vmem:[#allocation69_spill] sm:$0xff] }
 0x207   : > { %v3456_v1 = vsel %vm1476_vm7, %v1462_v23, %v997_v17  ;;  %1154 = vrot.lane.b32.xlu2 %v4512_v12, %s2135_s24  ;;  %v1465_v23 = vsel %vm1443_vm6, %v1432_v55, %v3222_v54  ;;  %v1411_v12 = vsel %vm1410_vm5, %v1378_v26, %v4526_v16  ;;  %v1400_v54 = vsel %vm1377_vm4, %v1367_v35, %v4528_v28 }
 0x208   : > { %1298 = vrot.lane.b32.xlu1 %v2770_v11, %s2136_s25  ;;  %v1444_v49 = vsel %vm1443_vm6, %v1411_v12, %v4529_v40  ;;  %v1433_v25 = vsel %vm1410_vm5, %v1400_v54, %v4530_v10  ;;  %v4540_v12 = vld [vmem:[#allocation101_spill] sm:$0xff]  ;;  %v4542_v54 = vld [vmem:[#allocation128_spill] sm:$0xff] }
 0x209   : > { %v1019_v21 = vpop.permute.xlu2 %1018  ;;  %v1477_v42 = vsel %vm1476_vm7, %v1444_v49, %v3262_v4  ;;  %v1466_v41 = vsel %vm1443_vm6, %v1433_v25, %v4533_v47  ;;  %v4535_v4 = vld [vmem:[#allocation66_spill] sm:$0xff]  ;;  %v4544_v10 = vld [vmem:[#allocation129_spill] sm:$0xff] }
 0x20a   : > { %v3483_v11 = vsel %vm1476_vm7, %v1473_v15, %v1019_v21  ;;  %v999_v3 = vpop.permute.xlu1 %998  ;;  %v4531_v21 = vld [vmem:[#allocation92_spill] sm:$0xff]  ;;  %v4543_v49 = vld [vmem:[#allocation46_spill] sm:$0xff]  ;;  %v4545_v25 = vld [vmem:[#allocation157_spill] sm:$0xff] }
 0x20b   : > { %v3488_v9 = vsel %vm1476_vm7, %v1463_v30, %v999_v3  ;;  %v1369_v58 = vsel %vm1344_vm3, %v4532_v48, %v4531_v21  ;;  %v4547_v21 = vld [vmem:[#allocation150_spill] sm:$0xff] }
 0x20c   : > { %1170 = vrot.lane.b32.xlu0 %v4521_v22, %s2135_s24  ;;  %v1402_v52 = vsel %vm1377_vm4, %v1369_v58, %v4534_v18  ;;  %v4549_v18 = vld [vmem:[#allocation39_spill] sm:$0xff] }
 0x20d   : > { %v1435_v55 = vsel %vm1410_vm5, %v1402_v52, %v4536_v46 }
 0x20e   : > { %v1003_v17 = vpop.permute.xlu0 %1002  ;;  %v1468_v26 = vsel %vm1443_vm6, %v1435_v55, %v3234_v50 }
 0x20f   : > { %v3500_v2 = vsel %vm1476_vm7, %v1465_v23, %v1003_v17  ;;  %1250 = vrot.lane.b32.xlu2 %v4527_v38, %s2136_s25  ;;  %v4538_v23 = vld [vmem:[#allocation8_spill] sm:$0xff]  ;;  %v4541_v38 = vld [vmem:[#allocation33_spill] sm:$0xff] }
 0x210   : > { %1092 = vrot.lane.b32.xlu1 %v4525_v63, %s2134_s23  ;;  %v1348_v17 = vsel %vm1344_vm3, %v4538_v23, %v4537_v5  ;;  %v4539_v63 = vld [vmem:[#allocation109_spill] sm:$0xff]  ;;  %v1370_v28 = vsel %vm1344_vm3, %v4541_v38, %v4540_v12  ;;  %v4551_v23 = vld [vmem:[#allocation130_spill] sm:$0xff] }
 0x211   : > { %v1057_v15 = vpop.permute.xlu2 %1056  ;;  %v1381_v35 = vsel %vm1377_vm4, %v1348_v17, %v4539_v63  ;;  %v1403_v50 = vsel %vm1377_vm4, %v1370_v28, %v4544_v10 }
 0x212   : > { %v3525_v30 = vsel %vm1509_vm8, %v1477_v42, %v1057_v15  ;;  %v1005_v3 = vpop.permute.xlu1 %1004  ;;  %v1414_v40 = vsel %vm1410_vm5, %v1381_v35, %v4542_v54  ;;  %v4546_v15 = vld [vmem:[#allocation35_spill] sm:$0xff]  ;;  %v1436_v58 = vsel %vm1410_vm5, %v1403_v50, %v4547_v21 }
 0x213   : > { %v3530_v22 = vsel %vm1476_vm7, %v1466_v41, %v1005_v3  ;;  %v1447_v42 = vsel %vm1443_vm6, %v1414_v40, %v4545_v25  ;;  %v4548_v3 = vld [vmem:[#allocation95_spill] sm:$0xff]  ;;  %v4556_v25 = vld [vmem:[#allocation104_spill] sm:$0xff] }
 0x214   : > { %1266 = vrot.lane.b32.xlu0 %v4535_v4, %s2136_s25  ;;  %v1480_v47 = vsel %vm1476_vm7, %v1447_v42, %v3283_v53  ;;  %v1372_v52 = vsel %vm1344_vm3, %v4549_v18, %v4548_v3  ;;  %v4550_v4 = vld [vmem:[#allocation162_spill] sm:$0xff]  ;;  %v4552_v53 = vld [vmem:[#allocation84_spill] sm:$0xff]  ;;  %v4554_v35 = vld [vmem:[#allocation59_spill] sm:$0xff]  ;;  %v1373_v42 = vsel %vm1344_vm3, %v2507_v45, %v4556_v25 }
 0x215   : > { %v1469_v46 = vsel %vm1443_vm6, %v1436_v58, %v4550_v4  ;;  %v1405_v17 = vsel %vm1377_vm4, %v1372_v52, %v4551_v23  ;;  %v1351_v12 = vsel %vm1344_vm3, %v2229_v36, %v4554_v35  ;;  %v4555_v40 = vld [vmem:[#allocation111_spill] sm:$0xff]  ;;  %v4558_v36 = vld [vmem:[#allocation132_spill] sm:$0xff]  ;;  %v4569_v25 = vld [vmem:[#allocation170_spill] sm:$0xff] }
 0x216   : > { %v1009_v39 = vpop.permute.xlu0 %1008  ;;  %v1384_v10 = vsel %vm1377_vm4, %v1351_v12, %v4555_v40  ;;  %v4559_v58 = vld [vmem:[#allocation159_spill] sm:$0xff]  ;;  %v4561_v3 = vld [vmem:[#allocation152_spill] sm:$0xff]  ;;  %v4566_v12 = vld [vmem:[#allocation149_spill] sm:$0xff] }
 0x217   : > { %v3544_v16 = vsel %vm1476_vm7, %v1468_v26, %v1009_v39  ;;  %1108 = vrot.lane.b32.xlu2 %v4543_v49, %s2134_s23  ;;  %v4553_v39 = vld [vmem:[#allocation145_spill] sm:$0xff] }
 0x218   : > { %1188 = vrot.lane.b32.xlu1 %v4546_v15, %s2135_s24  ;;  %v1438_v63 = vsel %vm1410_vm5, %v1405_v17, %v4553_v39  ;;  %v4557_v15 = vld [vmem:[#allocation131_spill] sm:$0xff]  ;;  %v4564_v39 = vld [vmem:[#allocation133_spill] sm:$0xff] }
 0x219   : > { %v1063_v41 = vpop.permute.xlu2 %1062  ;;  %v1471_v28 = vsel %vm1443_vm6, %v1438_v63, %v3246_v33  ;;  %v1417_v21 = vsel %vm1410_vm5, %v1384_v10, %v4557_v15  ;;  %v1406_v33 = vsel %vm1377_vm4, %v1373_v42, %v4558_v36  ;;  %v2098_v10 = vunpack.i.h.bf16 %v4515_v27  ;;  %v4570_v36 = vld [vmem:[#allocation113_spill] sm:$0xff]  ;;  %v4574_v27 = vld [vmem:[#allocation134_spill] sm:$0xff] }
 0x21a   : > { %v3569_v55 = vsel %vm1509_vm8, %v1480_v47, %v1063_v41  ;;  %v1011_v5 = vpop.permute.xlu1 %1010  ;;  %v1450_v47 = vsel %vm1443_vm6, %v1417_v21, %v4559_v58  ;;  %v4560_v41 = vld [vmem:[#allocation48_spill] sm:$0xff]  ;;  %v1439_v52 = vsel %vm1410_vm5, %v1406_v33, %v4561_v3  ;;  %v2103_v21 = vunpack.i.h.bf16 %v4518_v57 }
 0x21b   : > { %v3574_v26 = vsel %vm1476_vm7, %v1469_v46, %v1011_v5  ;;  %v1483_v45 = vsel %vm1476_vm7, %v1450_v47, %v3305_v37  ;;  %v4562_v46 = vld [vmem:[#allocation98_spill] sm:$0xff]  ;;  %v4563_v5 = vld [vmem:[#allocation164_spill] sm:$0xff]  ;;  %v4571_v47 = vld [vmem:[#allocation107_spill] sm:$0xff] }
 0x21c   : > { %1284 = vrot.lane.b32.xlu0 %v4552_v53, %s2136_s25  ;;  %v1472_v23 = vsel %vm1443_vm6, %v1439_v52, %v4563_v5  ;;  %v4565_v37 = vld [vmem:[#allocation12_spill] sm:$0xff]  ;;  %v4573_v52 = vld [vmem:[#allocation19_spill] sm:$0xff] }
 0x21d   : > { %v4575_v57 = vld [vmem:[#allocation160_spill] sm:$0xff]  ;;  %v4577_v5 = vld [vmem:[#allocation3_spill] sm:$0xff] }
 0x21e   : > { %v1015_v54 = vpop.permute.xlu0 %1014 }
 0x21f   : > { %v3588_v50 = vsel %vm1476_vm7, %v1471_v28, %v1015_v54  ;;  %1300 = vrot.lane.b32.xlu2 %v2784_v0, %s2136_s25  ;;  %v1375_v0 = vsel %vm1344_vm3, %v4543_v49, %v4562_v46  ;;  %v4567_v49 = vld [vmem:[#allocation63_spill] sm:$0xff]  ;;  %v4568_v54 = vld [vmem:[#allocation14_spill] sm:$0xff] }
 0x220   : > { %1204 = vrot.lane.b32.xlu1 %v4560_v41, %s2135_s24  ;;  %v1408_v63 = vsel %vm1377_vm4, %v1375_v0, %v4564_v39  ;;  %v1354_v40 = vsel %vm1344_vm3, %v4568_v54, %v4567_v49  ;;  %v4572_v41 = vld [vmem:[#allocation45_spill] sm:$0xff]  ;;  %v4576_v0 = vld [vmem:[#allocation23_spill] sm:$0xff] }
 0x221   : > { %v1069_v4 = vpop.permute.xlu2 %1068  ;;  %v1441_v28 = vsel %vm1410_vm5, %v1408_v63, %v4566_v12  ;;  %v1387_v33 = vsel %vm1377_vm4, %v1354_v40, %v4570_v36  ;;  %v1376_v3 = vsel %vm1344_vm3, %v4572_v41, %v4571_v47  ;;  %v4579_v12 = vld [vmem:[#allocation166_spill] sm:$0xff]  ;;  %v1612_v40 = vld [vmem:[%s4143_s1 + $0x20] sm:$0xf] }
 0x222   : > { %v3613_v17 = vsel %vm1509_vm8, %v1483_v45, %v1069_v4  ;;  %v1017_v53 = vpop.permute.xlu1 %1016  ;;  %v1474_v42 = vsel %vm1443_vm6, %v1441_v28, %v4569_v25  ;;  %v1420_v45 = vsel %vm1410_vm5, %v1387_v33, %v4573_v52  ;;  %v1409_v4 = vsel %vm1377_vm4, %v1376_v3, %v4574_v27  ;;  %2061 = vmatpush.msk.msra.mxu1 %vm1714_vm9, %v1612_v40  ;;  %v4583_v3 = vld [vmem:[#allocation71_spill] sm:$0xff]  ;;  %v4584_v52 = vld [vmem:[#allocation9_spill] sm:$0xff] }
 0x223   : > { %v3618_v35 = vsel %vm1476_vm7, %v1472_v23, %v1017_v53  ;;  %v1453_v46 = vsel %vm1443_vm6, %v1420_v45, %v4575_v57  ;;  %v1346_v23 = vsel %vm1344_vm3, %v4577_v5, %v2098_v10  ;;  %v4578_v53 = vld [vmem:[#allocation155_spill] sm:$0xff]  ;;  %2062 = vmatpush.msk.msra.mxu2 %vm1714_vm9, %v1612_v40  ;;  %2063 = vmatpush.msk.msra.mxu3 %vm1714_vm9, %v1612_v40  ;;  %v4585_v57 = vld [vmem:[#allocation100_spill] sm:$0xff] }
 0x224   : > { %1156 = vrot.lane.b32.xlu0 %v4565_v37, %s2135_s24  ;;  %v1442_v39 = vsel %vm1410_vm5, %v1409_v4, %v4578_v53  ;;  %v1486_v63 = vsel %vm1476_vm7, %v1453_v46, %v3327_v32  ;;  %v4580_v10 = vld [vmem:[#allocation135_spill] sm:$0xff]  ;;  %2025 = vmatpush.msk.msra.mxu0 %vm1714_vm9, %v1612_v40  ;;  %v1347_v45 = vsel %vm1344_vm3, %v4584_v52, %v4583_v3  ;;  %v4588_v53 = vld [vmem:[#allocation64_spill] sm:$0xff]  ;;  %v4592_v40 = vld [vmem:[#allocation110_spill] sm:$0xff] }
 0x225   : > { %v1475_v28 = vsel %vm1443_vm6, %v1442_v39, %v4579_v12  ;;  %v1610_v4 = vld [vmem:[%s4143_s1 + $0x10] sm:$0xff]  ;;  %v1380_v46 = vsel %vm1377_vm4, %v1347_v45, %v4585_v57  ;;  %v1609_v39 = vld [vmem:[%s4143_s1 + $0x8] sm:$0xff]  ;;  %v4591_v12 = vld [vmem:[#allocation156_spill] sm:$0xff] }
 0x226   : > { %v1021_v15 = vpop.permute.xlu0 %1020  ;;  %v4595_v45 = vld [vmem:[#allocation151_spill] sm:$0xff] }
 0x227   : > { %v3634_v58 = vsel %vm1476_vm7, %v1474_v42, %v1021_v15  ;;  %1094 = vrot.lane.b32.xlu2 %v2424_v31, %s2134_s23  ;;  %v1379_v31 = vsel %vm1377_vm4, %v1346_v23, %v2103_v21  ;;  %v4581_v42 = vld [vmem:[#allocation54_spill] sm:$0xff]  ;;  %v1611_v15 = vld [vmem:[%s4143_s1 + $0x18] sm:$0xff] }
 0x228   : > { %1172 = vrot.lane.b32.xlu1 %v4576_v0, %s2135_s24  ;;  %v1412_v25 = vsel %vm1410_vm5, %v1379_v31, %v4580_v10  ;;  %v4582_v21 = vld [vmem:[#allocation52_spill] sm:$0xff]  ;;  %2064 = vmatpush.msra.mxu1 %v1611_v15 }
 0x229   : > { %v1075_v37 = vpop.permute.xlu2 %1074  ;;  %v1445_v36 = vsel %vm1443_vm6, %v1412_v25, %v4582_v21  ;;  %2065 = vmatpush.msra.mxu2 %v1611_v15  ;;  %2066 = vmatpush.msra.mxu3 %v1611_v15  ;;  %v4587_v0 = vld [vmem:[#allocation136_spill] sm:$0xff]  ;;  %v4593_v25 = vld [vmem:[#allocation167_spill] sm:$0xff] }
 0x22a   : > { %v3659_v49 = vsel %vm1509_vm8, %v1486_v63, %v1075_v37  ;;  %v1023_v54 = vpop.permute.xlu1 %1022  ;;  %v1478_v33 = vsel %vm1476_vm7, %v1445_v36, %v3279_v62  ;;  %v4586_v62 = vld [vmem:[#allocation38_spill] sm:$0xff]  ;;  %2067 = vmatpush.msra.mxu1 %v1610_v4  ;;  %v1413_v23 = vsel %vm1410_vm5, %v1380_v46, %v4587_v0  ;;  %v4589_v63 = vld [vmem:[#allocation75_spill] sm:$0xff]  ;;  %1730 = vmatpush.msra.mxu0 %v1611_v15 }
 0x22b   : > { %v3667_v32 = vsel %vm1476_vm7, %v1475_v28, %v1023_v54  ;;  %2068 = vmatpush.msra.mxu2 %v1610_v4  ;;  %v4590_v37 = vld [vmem:[#allocation7_spill] sm:$0xff]  ;;  %v1446_v28 = vsel %vm1443_vm6, %v1413_v23, %v4591_v12  ;;  %2069 = vmatpush.msra.mxu3 %v1610_v4  ;;  %v4603_v12 = vld [vmem:[#allocation10_spill] sm:$0xff] }
 0x22c   : > { %1252 = vrot.lane.b32.xlu0 %v4581_v42, %s2136_s25  ;;  %v1349_v31 = vsel %vm1344_vm3, %v4590_v37, %v4589_v63  ;;  %2070 = vmatpush.msra.mxu1 %v1609_v39  ;;  %v1479_v42 = vsel %vm1476_vm7, %v1446_v28, %v4593_v25  ;;  %v4596_v15 = vld [vmem:[#allocation55_spill] sm:$0xff]  ;;  %v4599_v63 = vld [vmem:[#allocation50_spill] sm:$0xff]  ;;  %v4605_v25 = vld [vmem:[#allocation112_spill] sm:$0xff] }
 0x22d   : > { %v1382_v10 = vsel %vm1377_vm4, %v1349_v31, %v4592_v40  ;;  %2071 = vmatpush.msra.mxu2 %v1609_v39  ;;  %2072 = vmatpush.msra.mxu3 %v1609_v39  ;;  %v4600_v37 = vld [vmem:[#allocation139_spill] sm:$0xff]  ;;  %v4602_v31 = vld [vmem:[#allocation77_spill] sm:$0xff] }
 0x22e   : > { %v1059_v47 = vpop.permute.xlu0 %1058  ;;  %1731 = vmatpush.msra.mxu0 %v1610_v4  ;;  %v4601_v4 = vld [vmem:[#allocation82_spill] sm:$0xff]  ;;  %v1352_v28 = vsel %vm1344_vm3, %v4603_v12, %v4602_v31  ;;  %v4613_v31 = vld [vmem:[#allocation57_spill] sm:$0xff] }
 0x22f   : > { %v3682_v27 = vsel %vm1509_vm8, %v1478_v33, %v1059_v47  ;;  %1190 = vrot.lane.b32.xlu2 %v4586_v62, %s2135_s24  ;;  %v1608_v33 = vld [vmem:[%s4143_s1] sm:$0xff]  ;;  %v4597_v62 = vld [vmem:[#allocation6_spill] sm:$0xff] }
 0x230   : > { %1268 = vrot.lane.b32.xlu1 %v4588_v53, %s2136_s25  ;;  %v4594_v47 = vld [vmem:[#allocation137_spill] sm:$0xff]  ;;  %2073 = vmatpush.msra.mxu1 %v1608_v33  ;;  %v1350_v0 = vsel %vm1344_vm3, %v4597_v62, %v4596_v15 }
 0x231   : > { %v1081_v54 = vpop.permute.xlu2 %1080  ;;  %v1415_v3 = vsel %vm1410_vm5, %v1382_v10, %v4594_v47  ;;  %2074 = vmatpush.msra.mxu2 %v1608_v33  ;;  %2075 = vmatpush.msra.mxu3 %v1608_v33 }
 0x232   : > { %v3709_v21 = vsel %vm1509_vm8, %v3372_v60, %v1081_v54  ;;  %v1061_v36 = vpop.permute.xlu1 %1060  ;;  %v1448_v60 = vsel %vm1443_vm6, %v1415_v3, %v4595_v45  ;;  %1732 = vmatpush.msra.mxu0 %v1609_v39  ;;  %v4604_v54 = vld [vmem:[#allocation158_spill] sm:$0xff]  ;;  %v4607_v3 = vld [vmem:[#allocation140_spill] sm:$0xff] }
 0x233   : > { %v3717_v52 = vsel %vm1509_vm8, %v1479_v42, %v1061_v36  ;;  %v1481_v57 = vsel %vm1476_vm7, %v1448_v60, %v3301_v43  ;;  %v1385_v42 = vsel %vm1377_vm4, %v1352_v28, %v4605_v25  ;;  %v4606_v36 = vld [vmem:[#allocation168_spill] sm:$0xff] }
 0x234   : > { %1110 = vrot.lane.b32.xlu0 %v4572_v41, %s2134_s23  ;;  %v4598_v41 = vld [vmem:[#allocation102_spill] sm:$0xff]  ;;  %1733 = vmatpush.msra.mxu0 %v1608_v33  ;;  %v1418_v45 = vsel %vm1410_vm5, %v1385_v42, %v4607_v3  ;;  %v4616_v42 = vld [vmem:[#allocation37_spill] sm:$0xff] }
 0x235   : > { %v1383_v53 = vsel %vm1377_vm4, %v1350_v0, %v4598_v41  ;;  %v4610_v41 = vld [vmem:[#allocation22_spill] sm:$0xff] }
 0x236   : > { %v1065_v46 = vpop.permute.xlu0 %1064  ;;  %v1416_v43 = vsel %vm1410_vm5, %v1383_v53, %v4600_v37  ;;  %v4611_v53 = vld [vmem:[#allocation15_spill] sm:$0xff] }
 0x237   : > { %v3729_v23 = vsel %vm1509_vm8, %v1481_v57, %v1065_v46  ;;  %1206 = vrot.lane.b32.xlu2 %v4599_v63, %s2135_s24  ;;  %v1449_v40 = vsel %vm1443_vm6, %v1416_v43, %v4604_v54  ;;  %v4608_v57 = vld [vmem:[#allocation97_spill] sm:$0xff] }
 0x238   : > { %1286 = vrot.lane.b32.xlu1 %v4601_v4, %s2136_s25  ;;  %v1482_v39 = vsel %vm1476_vm7, %v1449_v40, %v4606_v36  ;;  %v4609_v46 = vld [vmem:[#allocation153_spill] sm:$0xff] }
 0x239   : > { %v1185_v10 = vpop.permute.xlu2 %1184  ;;  %v1451_v15 = vsel %vm1443_vm6, %v1418_v45, %v4609_v46  ;;  %v4614_v54 = vld [vmem:[#allocation81_spill] sm:$0xff]  ;;  %v4619_v45 = vld [vmem:[#allocation76_spill] sm:$0xff] }
 0x23a   : > { %v1067_v47 = vpop.permute.xlu1 %1066  ;;  %v1484_v33 = vsel %vm1476_vm7, %v1451_v15, %v3323_v56  ;;  %v4612_v56 = vld [vmem:[#allocation67_spill] sm:$0xff]  ;;  %v4615_v40 = vld [vmem:[#allocation13_spill] sm:$0xff] }
 0x23b   : > { %v3751_v60 = vsel %vm1509_vm8, %v1482_v39, %v1067_v47  ;;  %v1353_v25 = vsel %vm1344_vm3, %v4615_v40, %v4614_v54  ;;  %v4618_v39 = vld [vmem:[#allocation141_spill] sm:$0xff]  ;;  %v4625_v40 = vld [vmem:[#allocation163_spill] sm:$0xff] }
 0x23c   : > { %1302 = vrot.lane.b32.xlu0 %v4608_v57, %s2136_s25 }
 0x23e   : > { %v1071_v62 = vpop.permute.xlu0 %1070 }
 0x23f   : > { %v3760_v0 = vsel %vm1509_vm8, %v1484_v33, %v1071_v62  ;;  %1174 = vrot.lane.b32.xlu2 %v4610_v41, %s2135_s24  ;;  %v4621_v33 = vld [vmem:[#allocation85_spill] sm:$0xff]  ;;  %v4622_v41 = vld [vmem:[#allocation119_spill] sm:$0xff] }
 0x240   : > { %1158 = vrot.lane.b32.xlu1 %v4611_v53, %s2135_s24 }
 0x241   : > { %v1201_v63 = vpop.permute.xlu2 %1200 }
 0x242   : > { %v1073_v37 = vpop.permute.xlu1 %1072 }
 0x244   : > { %1096 = vrot.lane.b32.xlu0 %v4532_v48, %s2134_s23 }
 0x246   : > { %v1077_v43 = vpop.permute.xlu0 %1076 }
 0x247   : > { %v3770_v4 = vsel %vm1509_vm8, %v3360_v14, %v1077_v43  ;;  %1270 = vrot.lane.b32.xlu2 %v4612_v56, %s2136_s25  ;;  %v4617_v14 = vld [vmem:[#allocation105_spill] sm:$0xff] }
 0x248   : > { %1254 = vrot.lane.b32.xlu1 %v4613_v31, %s2136_s25  ;;  %v1386_v36 = vsel %vm1377_vm4, %v1353_v25, %v4617_v14  ;;  %v4623_v31 = vld [vmem:[#allocation148_spill] sm:$0xff] }
 0x249   : > { %v1169_v12 = vpop.permute.xlu2 %1168  ;;  %v1419_v47 = vsel %vm1410_vm5, %v1386_v36, %v4618_v39  ;;  %v4626_v36 = vld [vmem:[#allocation26_spill] sm:$0xff] }
 0x24a   : > { %v1079_v28 = vpop.permute.xlu1 %1078  ;;  %v1452_v57 = vsel %vm1443_vm6, %v1419_v47, %v4619_v45  ;;  %v4627_v45 = vld [vmem:[#allocation56_spill] sm:$0xff] }
 0x24b   : > { %v3781_v48 = vsel %vm1509_vm8, %v3277_v24, %v1079_v28  ;;  %v4620_v24 = vld [vmem:[#allocation169_spill] sm:$0xff] }
 0x24c   : > { %1192 = vrot.lane.b32.xlu0 %v4616_v42, %s2135_s24  ;;  %v1485_v15 = vsel %vm1476_vm7, %v1452_v57, %v4620_v24  ;;  %v4628_v57 = vld [vmem:[#allocation72_spill] sm:$0xff] }
 0x24d   : > { %v1518_v62 = vsel %vm1509_vm8, %v1485_v15, %v1073_v37  ;;  %v4624_v37 = vld [vmem:[#allocation17_spill] sm:$0xff] }
 0x24e   : > { %v1083_v3 = vpop.permute.xlu0 %1082  ;;  %v1551_v53 = vsel %vm1542_vm10, %v1518_v62, %v1169_v12  ;;  %v4629_v15 = vld [vmem:[#allocation121_spill] sm:$0xff] }
 0x24f   : > { %v3793_v46 = vsel %vm1509_vm8, %v3402_v29, %v1083_v3  ;;  %1288 = vrot.lane.b32.xlu2 %v4621_v33, %s2136_s25 }
 0x250   : > { %1112 = vrot.lane.b32.xlu1 %v4622_v41, %s2134_s23 }
 0x251   : > { %v1265_v43 = vpop.permute.xlu2 %1264 }
 0x252   : > { %v1089_v56 = vpop.permute.xlu1 %1088  ;;  %v1584_v29 = vsel %vm1575_vm11, %v1551_v53, %v1265_v43  ;;  %v4631_v53 = vld [vmem:[#allocation90_spill] sm:$0xff] }
 0x253   : > { %2034 = vmatmul.msk.f32.vlgmr.msra.gmra.mxu1 %vm1617_vm12, %v1584_v29  ;;  %v1526_v54 = vsel %vm1509_vm8, %v3444_v34, %v1089_v56 }
 0x254   : > { %1208 = vrot.lane.b32.xlu0 %v4623_v31, %s2135_s24  ;;  %v1559_v14 = vsel %vm1542_vm10, %v1526_v54, %v1185_v10  ;;  %v4632_v31 = vld [vmem:[#allocation165_spill] sm:$0xff] }
 0x256   : > { %v1105_v28 = vpop.permute.xlu0 %1104 }
 0x257   : > { %1160 = vrot.lane.b32.xlu2 %v4624_v37, %s2135_s24  ;;  %v1534_v25 = vsel %vm1509_vm8, %v3544_v16, %v1105_v28 }
 0x258   : > { %1304 = vrot.lane.b32.xlu1 %v4625_v40, %s2136_s25  ;;  %v1567_v47 = vsel %vm1542_vm10, %v1534_v25, %v1201_v63  ;;  %v4630_v63 = vld [vmem:[#allocation41_spill] sm:$0xff] }
 0x259   : > { %v1283_v12 = vpop.permute.xlu2 %1282 }
 0x25a   : > { %v1281_v42 = vpop.permute.xlu1 %1280 }
 0x25b   : > { %v1592_v39 = vsel %vm1575_vm11, %v1559_v14, %v1281_v42 }
 0x25c   : > { %1176 = vrot.lane.b32.xlu0 %v4626_v36, %s2135_s24  ;;  %2042 = vmatmul.msk.f32.vlgmr.msra.gmra.mxu2 %vm1617_vm12, %v1592_v39 }
 0x25e   : > { %v1297_v34 = vpop.permute.xlu0 %1296 }
 0x25f   : > { %v1600_v3 = vsel %vm1575_vm11, %v1567_v47, %v1297_v34  ;;  %1256 = vrot.lane.b32.xlu2 %v4627_v45, %s2136_s25  ;;  %v4636_v34 = vld [vmem:[#allocation58_spill] sm:$0xff]  ;;  %v2104_v45 = vpack.i.bf16 %v4577_v5, %v4523_v8  ;;  %v4640_v8 = vld [vmem:[#allocation88_spill] sm:$0xff] }
 0x260   : > { %2050 = vmatmul.msk.f32.vlgmr.msra.gmra.mxu3 %vm1617_vm12, %v1600_v3  ;;  %1098 = vrot.lane.b32.xlu1 %v4541_v38, %s2134_s23 }
 0x261   : > { %v1155_v16 = vpop.permute.xlu2 %1154 }
 0x262   : > { %v1153_v10 = vpop.permute.xlu1 %1152  ;;  %v1544_v37 = vsel %vm1542_vm10, %v3682_v27, %v1155_v16 }
 0x263   : > { %v1543_v62 = vsel %vm1542_vm10, %v3525_v30, %v1153_v10  ;;  %v4633_v30 = vld [vmem:[#allocation146_spill] sm:$0xff] }
 0x264   : > { %1272 = vrot.lane.b32.xlu0 %v4628_v57, %s2136_s25 }
 0x266   : > { %v1091_v24 = vpop.permute.xlu0 %1090 }
 0x267   : > { %1114 = vrot.lane.b32.xlu2 %v4629_v15, %s2134_s23  ;;  %v1527_v43 = vsel %vm1509_vm8, %v3321_v7, %v1091_v24  ;;  %v4634_v7 = vld [vmem:[#allocation16_spill] sm:$0xff] }
 0x268   : > { %1194 = vrot.lane.b32.xlu1 %v4630_v63, %s2135_s24  ;;  %v4639_v63 = vld [vmem:[#allocation5_spill] sm:$0xff] }
 0x269   : > { %v1251_v33 = vpop.permute.xlu2 %1250 }
 0x26a   : > { %v1249_v41 = vpop.permute.xlu1 %1248  ;;  %v1577_v25 = vsel %vm1575_vm11, %v1544_v37, %v1251_v33 }
 0x26b   : > { %v1576_v38 = vsel %vm1575_vm11, %v1543_v62, %v1249_v41  ;;  %v4641_v62 = vld [vmem:[#allocation36_spill] sm:$0xff] }
 0x26c   : > { %1290 = vrot.lane.b32.xlu0 %v4631_v53, %s2136_s25  ;;  %2026 = vmatmul.msk.f32.vlgmr.msra.gmra.mxu0 %vm1617_vm12, %v1576_v38 }
 0x26e   : > { %v1187_v56 = vpop.permute.xlu0 %1186 }
 0x26f   : > { %v1560_v29 = vsel %vm1542_vm10, %v1527_v43, %v1187_v56  ;;  %1306 = vrot.lane.b32.xlu2 %v4632_v31, %s2136_s25  ;;  %v4642_v43 = vld [vmem:[#allocation18_spill] sm:$0xff] }
 0x270   : > { %v1593_v28 = vsel %vm1575_vm11, %v1560_v29, %v1283_v12  ;;  %1210 = vrot.lane.b32.xlu1 %v4633_v30, %s2135_s24  ;;  %v4635_v12 = vld [vmem:[#allocation28_spill] sm:$0xff] }
 0x271   : > { %2043 = vmatmul.msk.f32.gmra.mxu2 %vm1617_vm12, %v1593_v28  ;;  %v1109_v54 = vpop.permute.xlu2 %1108  ;;  %v4643_v28 = vld [vmem:[#allocation27_spill] sm:$0xff] }
 0x272   : > { %v1107_v40 = vpop.permute.xlu1 %1106  ;;  %v1536_v29 = vsel %vm1509_vm8, %v3439_v19, %v1109_v54  ;;  %v4645_v19 = vld [vmem:[#allocation73_spill] sm:$0xff] }
 0x273   : > { %v1535_v14 = vsel %vm1509_vm8, %v3574_v26, %v1107_v40  ;;  %v4638_v26 = vld [vmem:[#allocation70_spill] sm:$0xff]  ;;  %v4644_v40 = vld [vmem:[#allocation61_spill] sm:$0xff] }
 0x274   : > { %1162 = vrot.lane.b32.xlu0 %v4634_v7, %s2135_s24  ;;  %2027 = vmatmul.msk.f32.gmra.mxu0 %vm1617_vm12, %v1577_v25 }
 0x276   : > { %v1203_v42 = vpop.permute.xlu0 %1202 }
 0x277   : > { %1100 = vrot.lane.b32.xlu2 %v4497_v59, %s2134_s23  ;;  %v1568_v27 = vsel %vm1542_vm10, %v1535_v14, %v1203_v42  ;;  %v4637_v59 = vld [vmem:[#allocation44_spill] sm:$0xff]  ;;  %v4647_v14 = vld [vmem:[#allocation43_spill] sm:$0xff] }
 0x278   : > { %1178 = vrot.lane.b32.xlu1 %v4635_v12, %s2135_s24  ;;  %v4646_v12 = vld [vmem:[#allocation91_spill] sm:$0xff] }
 0x279   : > { %v1301_v36 = vpop.permute.xlu2 %1300 }
 0x27a   : > { %v1299_v39 = vpop.permute.xlu1 %1298 }
 0x27b   : > { %v1601_v47 = vsel %vm1575_vm11, %v1568_v27, %v1299_v39 }
 0x27c   : > { %1258 = vrot.lane.b32.xlu0 %v4636_v34, %s2136_s25  ;;  %2051 = vmatmul.msk.f32.gmra.mxu3 %vm1617_vm12, %v1601_v47  ;;  %v4648_v34 = vld [vmem:[#allocation29_spill] sm:$0xff]  ;;  %v4649_v47 = vld [vmem:[#allocation20_spill] sm:$0xff] }
 0x27e   : > { %v1171_v3 = vpop.permute.xlu0 %1170 }
 0x27f   : > { %1196 = vrot.lane.b32.xlu2 %v4637_v59, %s2135_s24  ;;  %v1552_v57 = vsel %vm1542_vm10, %v3659_v49, %v1171_v3 }
 0x280   : > { %1274 = vrot.lane.b32.xlu1 %v4638_v26, %s2136_s25 }
 0x281   : > { %v1095_v16 = vpop.permute.xlu2 %1094 }
 0x282   : > { %v1093_v10 = vpop.permute.xlu1 %1092  ;;  %v1529_v3 = vsel %vm1509_vm8, %v3488_v9, %v1095_v16 }
 0x283   : > { %v1528_v41 = vsel %vm1509_vm8, %v3456_v1, %v1093_v10  ;;  %v4650_v10 = vld [vmem:[#allocation60_spill] sm:$0xff] }
 0x284   : > { %2105 = vrot.lane.b32.xlu0 %v2104_v45, %s2134_s23 }
 0x286   : > { %v1267_v24 = vpop.permute.xlu0 %1266 }
 0x287   : > { %v1585_v15 = vsel %vm1575_vm11, %v1552_v57, %v1267_v24  ;;  %2110 = vrot.lane.b32.xlu2 %v4639_v63, %s2135_s24 }
 0x288   : > { %2035 = vmatmul.msk.f32.gmra.mxu1 %vm1617_vm12, %v1585_v15  ;;  %1292 = vrot.lane.b32.xlu1 %v4640_v8, %s2136_s25 }
 0x289   : > { %v1191_v5 = vpop.permute.xlu2 %1190 }
 0x28a   : > { %v1189_v33 = vpop.permute.xlu1 %1188 }
 0x28b   : > { %v1561_v49 = vsel %vm1542_vm10, %v1528_v41, %v1189_v33 }
 0x28c   : > { %2115 = vrot.lane.b32.xlu0 %v4641_v62, %s2136_s25 }
 0x28e   : > { %v1285_v53 = vpop.permute.xlu0 %1284 }
 0x28f   : > { %v1594_v38 = vsel %vm1575_vm11, %v1561_v49, %v1285_v53  ;;  %1164 = vrot.lane.b32.xlu2 %v4642_v43, %s2135_s24 }
 0x290   : > { %2044 = vmatmul.msk.f32.gmra.mxu2 %vm1617_vm12, %v1594_v38  ;;  %1084 = vrot.lane.b32.xlu1 %v4504_v13, %s2134_s23 }
 0x291   : > { %v1207_v56 = vpop.permute.xlu2 %1206 }
 0x292   : > { %v1205_v31 = vpop.permute.xlu1 %1204 }
 0x293   : > { %v1569_v1 = vsel %vm1542_vm10, %v1536_v29, %v1205_v31 }
 0x294   : > { %1180 = vrot.lane.b32.xlu0 %v4643_v28, %s2135_s24  ;;  %v1602_v30 = vsel %vm1575_vm11, %v1569_v1, %v1301_v36 }
 0x295   : > { %2052 = vmatmul.msk.f32.gmra.mxu3 %vm1617_vm12, %v1602_v30 }
 0x296   : > { %v1157_v37 = vpop.permute.xlu0 %1156 }
 0x297   : > { %1260 = vrot.lane.b32.xlu2 %v4644_v40, %s2136_s25  ;;  %v1545_v54 = vsel %vm1542_vm10, %v3717_v52, %v1157_v37 }
 0x298   : > { %1102 = vrot.lane.b32.xlu1 %v4549_v18, %s2134_s23 }
 0x299   : > { %v1175_v13 = vpop.permute.xlu2 %1174 }
 0x29a   : > { %v1173_v7 = vpop.permute.xlu1 %1172 }
 0x29b   : > { %v1553_v36 = vsel %vm1542_vm10, %v3770_v4, %v1173_v7  ;;  %v1562_v4 = vsel %vm1542_vm10, %v1529_v3, %v1191_v5 }
 0x29c   : > { %1276 = vrot.lane.b32.xlu0 %v4645_v19, %s2136_s25 }
 0x29e   : > { %v1253_v25 = vpop.permute.xlu0 %1252 }
 0x29f   : > { %v1578_v42 = vsel %vm1575_vm11, %v1545_v54, %v1253_v25  ;;  %1294 = vrot.lane.b32.xlu2 %v4646_v12, %s2136_s25 }
 0x2a0   : > { %2028 = vmatmul.msk.f32.gmra.mxu0 %vm1617_vm12, %v1578_v42  ;;  %1198 = vrot.lane.b32.xlu1 %v4647_v14, %s2135_s24 }
 0x2a1   : > { %v1271_v18 = vpop.permute.xlu2 %1270 }
 0x2a2   : > { %v1269_v27 = vpop.permute.xlu1 %1268 }
 0x2a3   : > { %v1586_v52 = vsel %vm1575_vm11, %v1553_v36, %v1269_v27 }
 0x2a4   : > { %1086 = vrot.lane.b32.xlu0 %v4510_v61, %s2134_s23  ;;  %2036 = vmatmul.msk.f32.gmra.mxu1 %vm1617_vm12, %v1586_v52  ;;  %v1554_v61 = vsel %vm1542_vm10, %v3781_v48, %v1175_v13 }
 0x2a5   : > { %v1587_v57 = vsel %vm1575_vm11, %v1554_v61, %v1271_v18 }
 0x2a6   : > { %v1111_v39 = vpop.permute.xlu0 %1110 }
 0x2a7   : > { %1182 = vrot.lane.b32.xlu2 %v4648_v34, %s2135_s24  ;;  %v1537_v45 = vsel %vm1509_vm8, %v3588_v50, %v1111_v39  ;;  %v4651_v50 = vld [vmem:[#allocation78_spill] sm:$0xff] }
 0x2a8   : > { %1166 = vrot.lane.b32.xlu1 %v4649_v47, %s2135_s24  ;;  %v1570_v16 = vsel %vm1542_vm10, %v1537_v45, %v1207_v56 }
 0x2a9   : > { %v1289_v59 = vpop.permute.xlu2 %1288 }
 0x2aa   : > { %v1287_v26 = vpop.permute.xlu1 %1286 }
 0x2ab   : > { %v1595_v24 = vsel %vm1575_vm11, %v1562_v4, %v1287_v26 }
 0x2ac   : > { %1262 = vrot.lane.b32.xlu0 %v4650_v10, %s2136_s25  ;;  %2037 = vmatmul.msk.f32.gmra.mxu1 %vm1617_vm12, %v1587_v57 }
 0x2ad   : > { %2045 = vmatmul.msk.f32.gmra.mxu2 %vm1617_vm12, %v1595_v24 }
 0x2ae   : > { %v1303_v9 = vpop.permute.xlu0 %1302 }
 0x2af   : > { %v1603_v48 = vsel %vm1575_vm11, %v1570_v16, %v1303_v9 }
 0x2b0   : > { %2053 = vmatmul.msk.f32.gmra.mxu3 %vm1617_vm12, %v1603_v48  ;;  %1278 = vrot.lane.b32.xlu1 %v4651_v50, %s2136_s25 }
 0x2b1   : > { %v1161_v15 = vpop.permute.xlu2 %1160 }
 0x2b2   : > { %v1159_v63 = vpop.permute.xlu1 %1158  ;;  %v1547_v29 = vsel %vm1542_vm10, %v3729_v23, %v1161_v15 }
 0x2b3   : > { %v1546_v33 = vsel %vm1542_vm10, %v3569_v55, %v1159_v63 }
 0x2b6   : > { %v1097_v8 = vpop.permute.xlu0 %1096 }
 0x2b7   : > { %v1530_v49 = vsel %vm1509_vm8, %v3355_v51, %v1097_v8 }
 0x2b9   : > { %v1257_v5 = vpop.permute.xlu2 %1256 }
 0x2ba   : > { %v1255_v62 = vpop.permute.xlu1 %1254  ;;  %v1580_v31 = vsel %vm1575_vm11, %v1547_v29, %v1257_v5 }
 0x2bb   : > { %v1579_v41 = vsel %vm1575_vm11, %v1546_v33, %v1255_v62 }
 0x2bc   : > { %2029 = vmatmul.msk.f32.gmra.mxu0 %vm1617_vm12, %v1579_v41 }
 0x2be   : > { %v1193_v53 = vpop.permute.xlu0 %1192 }
 0x2bf   : > { %v1563_v38 = vsel %vm1542_vm10, %v1530_v49, %v1193_v53 }
 0x2c0   : > { %v1596_v43 = vsel %vm1575_vm11, %v1563_v38, %v1289_v59 }
 0x2c1   : > { %2046 = vmatmul.msk.f32.gmra.mxu2 %vm1617_vm12, %v1596_v43  ;;  %v1115_v56 = vpop.permute.xlu2 %1114 }
 0x2c2   : > { %v1113_v55 = vpop.permute.xlu1 %1112 }
 0x2c3   : > { %v1538_v51 = vsel %vm1509_vm8, %v3618_v35, %v1113_v55 }
 0x2c4   : > { %2030 = vmatmul.msk.f32.gmra.mxu0 %vm1617_vm12, %v1580_v31 }
 0x2c6   : > { %v1209_v1 = vpop.permute.xlu0 %1208 }
 0x2c7   : > { %v1571_v30 = vsel %vm1542_vm10, %v1538_v51, %v1209_v1 }
 0x2c9   : > { %v1307_v28 = vpop.permute.xlu2 %1306 }
 0x2ca   : > { %v1305_v37 = vpop.permute.xlu1 %1304 }
 0x2cb   : > { %v1604_v40 = vsel %vm1575_vm11, %v1571_v30, %v1305_v37 }
 0x2cc   : > { %2054 = vmatmul.msk.f32.gmra.mxu3 %vm1617_vm12, %v1604_v40 }
 0x2ce   : > { %v1177_v13 = vpop.permute.xlu0 %1176 }
 0x2cf   : > { %v1555_v19 = vsel %vm1542_vm10, %v3709_v21, %v1177_v13  ;;  %v1539_v21 = vsel %vm1509_vm8, %v3483_v11, %v1115_v56 }
 0x2d1   : > { %v1101_v7 = vpop.permute.xlu2 %1100 }
 0x2d2   : > { %v1099_v23 = vpop.permute.xlu1 %1098  ;;  %v1532_v63 = vsel %vm1509_vm8, %v3530_v22, %v1101_v7 }
 0x2d3   : > { %v1531_v12 = vsel %vm1509_vm8, %v3500_v2, %v1099_v23  ;;  %v3975_v2 = vld [vmem:[%s4144_s2] ss:$0 sm:$0xff] }
 0x2d6   : > { %v1273_v54 = vpop.permute.xlu0 %1272 }
 0x2d7   : > { %v1588_v25 = vsel %vm1575_vm11, %v1555_v19, %v1273_v54 }
 0x2d8   : > { %2038 = vmatmul.msk.f32.gmra.mxu1 %vm1617_vm12, %v1588_v25 }
 0x2d9   : > { %v1197_v35 = vpop.permute.xlu2 %1196 }
 0x2da   : > { %v1195_v42 = vpop.permute.xlu1 %1194  ;;  %v1565_v8 = vsel %vm1542_vm10, %v1532_v63, %v1197_v35 }
 0x2db   : > { %v1564_v14 = vsel %vm1542_vm10, %v1531_v12, %v1195_v42 }
 0x2de   : > { %v1291_v18 = vpop.permute.xlu0 %1290 }
 0x2df   : > { %v1597_v36 = vsel %vm1575_vm11, %v1564_v14, %v1291_v18 }
 0x2e0   : > { %2047 = vmatmul.msk.f32.gmra.mxu2 %vm1617_vm12, %v1597_v36 }
 0x2e1   : > { %v2111_v27 = vpop.permute.xlu2 %2110 }
 0x2e2   : > { %v1211_v52 = vpop.permute.xlu1 %1210  ;;  %v2112_v33 = vunpack.i.l.bf16 %v2111_v27  ;;  %v2113_v51 = vunpack.i.h.bf16 %v2111_v27 }
 0x2e3   : > { %v1572_v39 = vsel %vm1542_vm10, %v1539_v21, %v1211_v52 }
 0x2e4   : > { %v1605_v34 = vsel %vm1575_vm11, %v1572_v39, %v1307_v28 }
 0x2e5   : > { %2055 = vmatmul.msk.f32.gmra.mxu3 %vm1617_vm12, %v1605_v34  ;;  %v4036_v34 = vpop.f32.mrf.mxu2 }
 0x2e6   : > { %v1163_v47 = vpop.permute.xlu0 %1162 }
 0x2e7   : > { %v1548_v11 = vsel %vm1542_vm10, %v3751_v60, %v1163_v47 }
 0x2e9   : > { %v1735_v3 = vpop.f32.mrf.mxu0  ;;  %v1165_v59 = vpop.permute.xlu2 %1164 }
 0x2ea   : > { %v1736_v4 = vadd.f32 %v3975_v2, %v1735_v3  ;;  %v1179_v61 = vpop.permute.xlu1 %1178  ;;  %v1549_v60 = vsel %vm1542_vm10, %v3613_v17, %v1165_v59 }
 0x2eb   : > { %v1556_v57 = vsel %vm1542_vm10, %v3793_v46, %v1179_v61 }
 0x2ec   : > { %1845 = vst.msk [vmem:[#allocation2] sm:$0xff] %vm1377_vm4, %v1736_v4  ;;  %v1759_v4 = vpop.f32.mrf.mxu1 }
 0x2ee   : > { %v1259_v45 = vpop.permute.xlu0 %1258 }
 0x2ef   : > { %v1581_v26 = vsel %vm1575_vm11, %v1548_v11, %v1259_v45 }
 0x2f0   : > { %2031 = vmatmul.msk.f32.gmra.mxu0 %vm1617_vm12, %v1581_v26 }
 0x2f1   : > { %v1738_v10 = vpop.f32.mrf.mxu0  ;;  %v1261_v16 = vpop.permute.xlu2 %1260 }
 0x2f2   : > { %v1739_v24 = vadd.f32 %v3975_v2, %v1738_v10  ;;  %v1275_v9 = vpop.permute.xlu1 %1274  ;;  %v1582_v15 = vsel %vm1575_vm11, %v1549_v60, %v1261_v16 }
 0x2f3   : > { %v1589_v48 = vsel %vm1575_vm11, %v1556_v57, %v1275_v9 }
 0x2f4   : > { %1846 = vst.msk [vmem:[#allocation2 + $0x8] sm:$0xff] %vm1377_vm4, %v1739_v24  ;;  %2039 = vmatmul.msk.f32.gmra.mxu1 %vm1617_vm12, %v1589_v48  ;;  %v4040_v3 = vpop.f32.mrf.mxu2 }
 0x2f6   : > { %v2106_v50 = vpop.permute.xlu0 %2105 }
 0x2f7   : > { %v2107_v46 = vunpack.i.l.bf16 %v2106_v50  ;;  %v2108_v55 = vunpack.i.h.bf16 %v2106_v50 }
 0x2f8   : > { %2032 = vmatmul.msk.f32.gmra.mxu0 %vm1617_vm12, %v1582_v15 }
 0x2f9   : > { %v1540_v22 = vsel %vm1509_vm8, %v3634_v58, %v2107_v46  ;;  %v1541_v28 = vsel %vm1509_vm8, %v3667_v32, %v2108_v55  ;;  %v1295_v35 = vpop.permute.xlu2 %1294 }
 0x2fa   : > { %v1293_v5 = vpop.permute.xlu1 %1292  ;;  %v1573_v29 = vsel %vm1542_vm10, %v1540_v22, %v2112_v33  ;;  %v1574_v37 = vsel %vm1542_vm10, %v1541_v28, %v2113_v51 }
 0x2fb   : > { %v1881_v17 = vld [vmem:[#allocation2 + $0x1] ss:$2 sm:$0xff]  ;;  %v1598_v62 = vsel %vm1575_vm11, %v1565_v8, %v1293_v5  ;;  %v1863_v53 = vld [vmem:[#allocation2] ss:$2 sm:$0xff] }
 0x2fc   : > { %v1907_v41 = vrot.slane %v1881_v17, 7  ;;  %2048 = vmatmul.msk.f32.gmra.mxu2 %vm1617_vm12, %v1598_v62 }
 0x2fe   : > { %v2116_v49 = vpop.permute.xlu0 %2115  ;;  %v1925_v38 = vsel %vm236_vm0, -inf, %v1907_v41  ;;  %1945 = vst.msk [vmem:[%s4000_s16 + $0x8] sm:$0x1] %vm1944_vm13, %v1907_v41 }
 0x2ff   : > { %v2117_v43 = vunpack.i.l.bf16 %v2116_v49  ;;  %v1934_v56 = vmax.f32 %v1863_v53, %v1925_v38  ;;  %v2118_v58 = vunpack.i.h.bf16 %v2116_v49 }
 0x301   : > { %v1606_v31 = vsel %vm1575_vm11, %v1573_v29, %v2117_v43  ;;  %1943 = vst.msk [vmem:[%s4000_s16] sm:$0xff] %vm1377_vm4, %v1934_v56  ;;  %v1607_v40 = vsel %vm1575_vm11, %v1574_v37, %v2118_v58 }
 0x302   : > { %2056 = vmatmul.msk.f32.gmra.mxu3 %vm1617_vm12, %v1606_v31  ;;  %v1085_v1 = vpop.permute.xlu1 %1084 }
 0x303   : > { %v1524_v7 = vsel %vm1509_vm8, %v3299_v20, %v1085_v1 }
 0x305   : > { %v4046_v45 = vpop.f32.mrf.mxu1 }
 0x306   : > { %v1181_v30 = vpop.permute.xlu0 %1180 }
 0x307   : > { %v1557_v23 = vsel %vm1542_vm10, %v1524_v7, %v1181_v30 }
 0x30a   : > { %2057 = vmatmul.msk.f32.gmra.mxu3 %vm1617_vm12, %v1607_v40  ;;  %v1103_v13 = vpop.permute.xlu1 %1102 }
 0x30b   : > { %v1533_v32 = vsel %vm1509_vm8, %v3397_v44, %v1103_v13  ;;  %v1183_v44 = vpop.permute.xlu2 %1182 }
 0x30e   : > { %v1277_v19 = vpop.permute.xlu0 %1276 }
 0x30f   : > { %v1590_v54 = vsel %vm1575_vm11, %v1557_v23, %v1277_v19 }
 0x310   : > { %2040 = vmatmul.msk.f32.gmra.mxu1 %vm1617_vm12, %v1590_v54 }
 0x312   : > { %v1199_v25 = vpop.permute.xlu1 %1198 }
 0x313   : > { %v1566_v42 = vsel %vm1542_vm10, %v1533_v32, %v1199_v25  ;;  %v1789_v61 = vpop.f32.mrf.mxu2 }
 0x314   : > { %v1599_v12 = vsel %vm1575_vm11, %v1566_v42, %v1295_v35  ;;  %v1790_v60 = vadd.f32 %v3975_v2, %v1789_v61 }
 0x315   : > { %2049 = vmatmul.msk.f32.gmra.mxu2 %vm1617_vm12, %v1599_v12 }
 0x316   : > { %v1087_v14 = vpop.permute.xlu0 %1086 }
 0x317   : > { %v1525_v21 = vsel %vm1509_vm8, %v3414_v6, %v1087_v14  ;;  %v1760_v14 = vadd.f32 %v3975_v2, %v1759_v4 }
 0x318   : > { %v1558_v52 = vsel %vm1542_vm10, %v1525_v21, %v1183_v44 }
 0x31a   : > { %v1167_v20 = vpop.permute.xlu1 %1166 }
 0x31b   : > { %v1550_v18 = vsel %vm1542_vm10, %v3760_v0, %v1167_v20  ;;  %v4042_v0 = vpop.f32.mrf.mxu3 }
 0x31d   : > { %v1741_v59 = vpop.f32.mrf.mxu0 }
 0x31e   : > { %v1263_v36 = vpop.permute.xlu0 %1262  ;;  %v1742_v24 = vadd.f32 %v3975_v2, %v1741_v59 }
 0x31f   : > { %v1583_v27 = vsel %vm1575_vm11, %v1550_v18, %v1263_v36 }
 0x320   : > { %2033 = vmatmul.msk.f32.gmra.mxu0 %vm1617_vm12, %v1583_v27 }
 0x321   : > { %v1765_v9 = vpop.f32.mrf.mxu1 }
 0x322   : > { %v1279_v39 = vpop.permute.xlu1 %1278  ;;  %v1766_v22 = vadd.f32 %v3975_v2, %v1765_v9 }
 0x323   : > { %v1591_v47 = vsel %vm1575_vm11, %v1558_v52, %v1279_v39  ;;  %v4044_v6 = vpop.f32.mrf.mxu3 }
 0x324   : > { %2041 = vmatmul.msk.f32.gmra.mxu1 %vm1617_vm12, %v1591_v47 }
 0x329   : > { %v1768_v8 = vpop.f32.mrf.mxu1 }
 0x32a   : > { %v1769_v54 = vadd.f32 %v3975_v2, %v1768_v8 }
 0x32b   : > { %v1813_v10 = vpop.f32.mrf.mxu3 }
 0x32c   : > { %v1814_v33 = vadd.f32 %v3975_v2, %v1813_v10  ;;  %v1808_v10 = vadd.f32 %v3975_v2, %v4042_v0 }
 0x330   : > { %v1792_v26 = vpop.f32.mrf.mxu2 }
 0x331   : > { %v1793_v43 = vadd.f32 %v3975_v2, %v1792_v26 }
 0x333   : > { %v1816_v63 = vpop.f32.mrf.mxu3 }
 0x334   : > { %v1817_v31 = vadd.f32 %v3975_v2, %v1816_v63 }
 0x339   : > { %v1744_v11 = vpop.f32.mrf.mxu0 }
 0x33a   : > { %v1745_v28 = vadd.f32 %v3975_v2, %v1744_v11 }
 0x341   : > { %v1747_v57 = vpop.f32.mrf.mxu0 }
 0x342   : > { %v1748_v16 = vadd.f32 %v3975_v2, %v1747_v57 }
 0x344   : > { %v1795_v48 = vpop.f32.mrf.mxu2  ;;  %v1831_v50 = vmax.f32 %v1748_v16, %v1742_v24 }
 0x345   : > { %v1796_v15 = vadd.f32 %v3975_v2, %v1795_v48 }
 0x346   : > { %1847 = vst.msk [vmem:[#allocation2 + $0x10] sm:$0xff] %vm1377_vm4, %v1831_v50 }
 0x347   : > { %v1839_v46 = vmax.f32 %v1796_v15, %v1790_v60 }
 0x349   : > { %1855 = vst.msk [vmem:[#allocation2 + $0x50] sm:$0xff] %vm1377_vm4, %v1839_v46  ;;  %v1784_v46 = vadd.f32 %v3975_v2, %v4036_v34 }
 0x34f   : > { %v1819_v5 = vpop.f32.mrf.mxu3 }
 0x350   : > { %v1820_v17 = vadd.f32 %v3975_v2, %v1819_v5 }
 0x352   : > { %v1843_v62 = vmax.f32 %v1820_v17, %v1814_v33 }
 0x354   : > { %1859 = vst.msk [vmem:[#allocation2 + $0x70] sm:$0xff] %vm1377_vm4, %v1843_v62 }
 0x355   : > { %v1771_v41 = vpop.f32.mrf.mxu1 }
 0x356   : > { %v1772_v49 = vadd.f32 %v3975_v2, %v1771_v41  ;;  %v1811_v41 = vadd.f32 %v3975_v2, %v4044_v6 }
 0x358   : > { %v1835_v53 = vmax.f32 %v1772_v49, %v1766_v22 }
 0x35a   : > { %1851 = vst.msk [vmem:[#allocation2 + $0x30] sm:$0xff] %vm1377_vm4, %v1835_v53 }
 0x363   : > { %v1798_v38 = vpop.f32.mrf.mxu2 }
 0x364   : > { %v1799_v56 = vadd.f32 %v3975_v2, %v1798_v38 }
 0x366   : > { %v1840_v29 = vmax.f32 %v1799_v56, %v1793_v43  ;;  %v1763_v56 = vadd.f32 %v3975_v2, %v4046_v45 }
 0x368   : > { %1856 = vst.msk [vmem:[#allocation2 + $0x58] sm:$0xff] %vm1377_vm4, %v1840_v29  ;;  %v1822_v55 = vpop.f32.mrf.mxu3 }
 0x369   : > { %v1823_v1 = vadd.f32 %v3975_v2, %v1822_v55 }
 0x36b   : > { %v1844_v51 = vmax.f32 %v1823_v1, %v1817_v31  ;;  %v1787_v31 = vadd.f32 %v3975_v2, %v4040_v3 }
 0x36d   : > { %v1750_v58 = vpop.f32.mrf.mxu0  ;;  %1860 = vst.msk [vmem:[#allocation2 + $0x78] sm:$0xff] %vm1377_vm4, %v1844_v51 }
 0x36e   : > { %v1751_v30 = vadd.f32 %v3975_v2, %v1750_v58 }
 0x36f   : > { %v1891_v37 = vld [vmem:[#allocation2 + $0x51] ss:$2 sm:$0xff]  ;;  %v1873_v7 = vld [vmem:[#allocation2 + $0x50] ss:$2 sm:$0xff] }
 0x370   : > { %v1912_v40 = vrot.slane %v1891_v37, 7  ;;  %v1832_v13 = vmax.f32 %v1751_v30, %v1745_v28 }
 0x371   : > { %v1774_v19 = vpop.f32.mrf.mxu1 }
 0x372   : > { %v1930_v23 = vsel %vm236_vm0, -inf, %v1912_v40  ;;  %1955 = vst.msk [vmem:[%s4000_s16 + $0x58] sm:$0x1] %vm1944_vm13, %v1912_v40  ;;  %v1775_v25 = vadd.f32 %v3975_v2, %v1774_v19 }
 0x373   : > { %v1939_v32 = vmax.f32 %v1873_v7, %v1930_v23  ;;  %1848 = vst.msk [vmem:[#allocation2 + $0x18] sm:$0xff] %vm1377_vm4, %v1832_v13 }
 0x374   : > { %v1895_v35 = vld [vmem:[#allocation2 + $0x71] ss:$2 sm:$0xff]  ;;  %v1836_v42 = vmax.f32 %v1775_v25, %v1769_v54  ;;  %v1877_v36 = vld [vmem:[#allocation2 + $0x70] ss:$2 sm:$0xff] }
 0x375   : > { %1954 = vst.msk [vmem:[%s4000_s16 + $0x50] sm:$0xff] %vm1377_vm4, %v1939_v32  ;;  %v1753_v12 = vpop.f32.mrf.mxu0  ;;  %v1914_v20 = vrot.slane %v1895_v35, 7 }
 0x376   : > { %v1754_v18 = vadd.f32 %v3975_v2, %v1753_v12  ;;  %1852 = vst.msk [vmem:[#allocation2 + $0x38] sm:$0xff] %vm1377_vm4, %v1836_v42 }
 0x377   : > { %v1932_v27 = vsel %vm236_vm0, -inf, %v1914_v20  ;;  %1959 = vst.msk [vmem:[%s4000_s16 + $0x78] sm:$0x1] %vm1944_vm13, %v1914_v20 }
 0x378   : > { %v1833_v21 = vmax.f32 %v1760_v14, %v1754_v18  ;;  %v1941_v44 = vmax.f32 %v1877_v36, %v1932_v27 }
 0x37a   : > { %v1883_v52 = vld [vmem:[#allocation2 + $0x11] ss:$2 sm:$0xff]  ;;  %1849 = vst.msk [vmem:[#allocation2 + $0x20] sm:$0xff] %vm1377_vm4, %v1833_v21  ;;  %v1865_v47 = vld [vmem:[#allocation2 + $0x10] ss:$2 sm:$0xff] }
 0x37b   : > { %1958 = vst.msk [vmem:[%s4000_s16 + $0x70] sm:$0xff] %vm1377_vm4, %v1941_v44  ;;  %v1908_v39 = vrot.slane %v1883_v52, 7 }
 0x37d   : > { %v1926_v59 = vsel %vm236_vm0, -inf, %v1908_v39  ;;  %1947 = vst.msk [vmem:[%s4000_s16 + $0x18] sm:$0x1] %vm1944_vm13, %v1908_v39  ;;  %v1887_v61 = vld [vmem:[#allocation2 + $0x31] ss:$2 sm:$0xff] }
 0x37e   : > { %v1935_v4 = vmax.f32 %v1865_v47, %v1926_v59  ;;  %v1910_v11 = vrot.slane %v1887_v61, 7  ;;  %v1869_v57 = vld [vmem:[#allocation2 + $0x30] ss:$2 sm:$0xff] }
 0x37f   : > { %v1801_v26 = vpop.f32.mrf.mxu2 }
 0x380   : > { %1946 = vst.msk [vmem:[%s4000_s16 + $0x10] sm:$0xff] %vm1377_vm4, %v1935_v4  ;;  %v1928_v24 = vsel %vm236_vm0, -inf, %v1910_v11  ;;  %v1802_v9 = vadd.f32 %v3975_v2, %v1801_v26 }
 0x381   : > { %1951 = vst.msk [vmem:[%s4000_s16 + $0x38] sm:$0x1] %vm1944_vm13, %v1910_v11  ;;  %v1937_v16 = vmax.f32 %v1869_v57, %v1928_v24 }
 0x382   : > { %v1841_v48 = vmax.f32 %v1808_v10, %v1802_v9 }
 0x383   : > { %1950 = vst.msk [vmem:[%s4000_s16 + $0x30] sm:$0xff] %vm1377_vm4, %v1937_v16 }
 0x384   : > { %1857 = vst.msk [vmem:[#allocation2 + $0x60] sm:$0xff] %vm1377_vm4, %v1841_v48 }
 0x385   : > { %v1825_v60 = vpop.f32.mrf.mxu3 }
 0x386   : > { %v1826_v50 = vadd.f32 %v3975_v2, %v1825_v60 }
 0x388   : > { %1861 = vst.msk [vmem:[#allocation2 + $0x80] sm:$0xff] %vm1377_vm4, %v1826_v50 }
 0x38d   : > { %v1777_v0 = vpop.f32.mrf.mxu1  ;;  %v1828_v15 = vpop.f32.mrf.mxu3 }
 0x38e   : > { %v1778_v63 = vadd.f32 %v3975_v2, %v1777_v0  ;;  %v1829_v8 = vadd.f32 %v3975_v2, %v1828_v15 }
 0x390   : > { %v1837_v5 = vmax.f32 %v1784_v46, %v1778_v63  ;;  %1862 = vst.msk [vmem:[#allocation2 + $0x88] sm:$0xff] %vm1377_vm4, %v1829_v8 }
 0x392   : > { %1853 = vst.msk [vmem:[#allocation2 + $0x40] sm:$0xff] %vm1377_vm4, %v1837_v5 }
 0x397   : > { %v1897_v33 = vld [vmem:[#allocation2 + $0x81] ss:$2 sm:$0xff]  ;;  %v1879_v22 = vld [vmem:[#allocation2 + $0x80] ss:$2 sm:$0xff] }
 0x398   : > { %v1915_v17 = vrot.slane %v1897_v33, 7  ;;  %v1804_v62 = vpop.f32.mrf.mxu2 }
 0x399   : > { %v1805_v34 = vadd.f32 %v3975_v2, %v1804_v62 }
 0x39a   : > { %v1933_v49 = vsel %vm236_vm0, -inf, %v1915_v17  ;;  %1961 = vst.msk [vmem:[%s4000_s16 + $0x88] sm:$0x1] %vm1944_vm13, %v1915_v17 }
 0x39b   : > { %v1942_v53 = vmax.f32 %v1879_v22, %v1933_v49  ;;  %v1842_v38 = vmax.f32 %v1811_v41, %v1805_v34 }
 0x39d   : > { %1960 = vst.msk [vmem:[%s4000_s16 + $0x80] sm:$0xff] %vm1377_vm4, %v1942_v53  ;;  %v1756_v43 = vpop.f32.mrf.mxu0 }
 0x39e   : > { %1858 = vst.msk [vmem:[#allocation2 + $0x68] sm:$0xff] %vm1377_vm4, %v1842_v38  ;;  %v1757_v6 = vadd.f32 %v3975_v2, %v1756_v43 }
 0x3a0   : > { %v1834_v29 = vmax.f32 %v1763_v56, %v1757_v6 }
 0x3a1   : > { %v1780_v55 = vpop.f32.mrf.mxu1 }
 0x3a2   : > { %1850 = vst.msk [vmem:[#allocation2 + $0x28] sm:$0xff] %vm1377_vm4, %v1834_v29  ;;  %v1781_v1 = vadd.f32 %v3975_v2, %v1780_v55 }
 0x3a4   : > { %v1838_v58 = vmax.f32 %v1787_v31, %v1781_v1 }
 0x3a5   : > { %v1893_v51 = vld [vmem:[#allocation2 + $0x61] ss:$2 sm:$0xff]  ;;  %v1875_v45 = vld [vmem:[#allocation2 + $0x60] ss:$2 sm:$0xff] }
 0x3a6   : > { %v1913_v28 = vrot.slane %v1893_v51, 7  ;;  %1854 = vst.msk [vmem:[#allocation2 + $0x48] sm:$0xff] %vm1377_vm4, %v1838_v58 }
 0x3a8   : > { %v1931_v30 = vsel %vm236_vm0, -inf, %v1913_v28  ;;  %1957 = vst.msk [vmem:[%s4000_s16 + $0x68] sm:$0x1] %vm1944_vm13, %v1913_v28 }
 0x3a9   : > { %v1940_v37 = vmax.f32 %v1875_v45, %v1931_v30  ;;  %v1885_v40 = vld [vmem:[#allocation2 + $0x21] ss:$2 sm:$0xff]  ;;  %v1867_v3 = vld [vmem:[#allocation2 + $0x20] ss:$2 sm:$0xff] }
 0x3aa   : > { %v1909_v13 = vrot.slane %v1885_v40, 7 }
 0x3ab   : > { %1956 = vst.msk [vmem:[%s4000_s16 + $0x60] sm:$0xff] %vm1377_vm4, %v1940_v37 }
 0x3ac   : > { %v1927_v2 = vsel %vm236_vm0, -inf, %v1909_v13  ;;  %1949 = vst.msk [vmem:[%s4000_s16 + $0x28] sm:$0x1] %vm1944_vm13, %v1909_v13 }
 0x3ad   : > { %v1936_v7 = vmax.f32 %v1867_v3, %v1927_v2  ;;  %v1889_v23 = vld [vmem:[#allocation2 + $0x41] ss:$2 sm:$0xff]  ;;  %v1871_v54 = vld [vmem:[#allocation2 + $0x40] ss:$2 sm:$0xff] }
 0x3ae   : > { %v1911_v19 = vrot.slane %v1889_v23, 7 }
 0x3af   : > { %1948 = vst.msk [vmem:[%s4000_s16 + $0x20] sm:$0xff] %vm1377_vm4, %v1936_v7 }
 0x3b0   : > { %v1929_v32 = vsel %vm236_vm0, -inf, %v1911_v19  ;;  %1953 = vst.msk [vmem:[%s4000_s16 + $0x48] sm:$0x1] %vm1944_vm13, %v1911_v19 }
 0x3b1   : > { %v1938_v25 = vmax.f32 %v1871_v54, %v1929_v32 }
 0x3b3   : > { %1952 = vst.msk [vmem:[%s4000_s16 + $0x40] sm:$0xff] %vm1377_vm4, %v1938_v25 }
 0x3b4 PF: > { %s13_s12 = sadd.s32 1, %s2126_s12  }
 0x3b5   : > { %p10_p4 = scmp.ge.s32.totalorder %s13_s12, 4  }
 0x3b7   :  { %12 = sbr.rel (!%p10_p4) target bundleno = 1 (0x1), region = 79 }

</bundles_post_ra>
